<compile_context>
chip_gen: v7x
topology: tpu7x:2x2x1
jax: 0.10.0
libtpu: 0.0.40
codegen_flags: <defaults>
</compile_context>

<pallas_src>
import functools
from typing import NamedTuple

import jax
import jax.numpy as jnp
from jax.experimental import pallas as pl
from jax.experimental.pallas import tpu as pltpu


def _pad_to(n, m):
    return ((n + m - 1) // m) * m


def _query_hw():
    """One-time (import-time) hardware query: #TensorCores per device, VMEM."""
    n_tc, vmem_cap = 1, 64 << 20  # conservative fallback (v7x per-TC VMEM)
    try:
        kind = jax.devices()[0].device_kind.lower()
        if ("v7" in kind) or ("v5p" in kind) or ("v4" in kind):
            n_tc = 2  # 2 TensorCores share the grid via "parallel" semantics
    except Exception:
        pass
    try:
        vmem_cap = int(pltpu.get_tpu_info().vmem_capacity_bytes)
    except Exception:
        pass
    return n_tc, vmem_cap


_NUM_TC, _VMEM_CAP = _query_hw()


class _Meta(NamedTuple):
    h: int       # true hidden width (for slicing main_p / aux_h)
    ncls: int    # true number of classes (for slicing logits)
    p_pad: int   # lane-aligned split point inside the fused [Wp1 | Wc] block


# --------------------------------------------------------------------------- #
# Kernel
# --------------------------------------------------------------------------- #
def _bld_kernel(
    main_x_ref, aux_x_ref,
    we_ref, be_ref,            # main encoder          (bf16 W, f32 b)
    wpc_ref, bpc_ref,          # fused [predictor-L1 | classifier], lane-padded
    wp2_ref, bp2_ref,          # predictor layer 2     (output padded to H_pad)
    wfc_ref, bfc_ref,          # fc head               (classes padded, b=-1e30)
    wea_ref, bea_ref,          # aux encoder (frozen, re-initialized)
    main_p_ref, aux_h_ref, logits_ref,
    *, p_pad,
):
    f32 = jnp.float32
    bdt = we_ref.dtype  # bf16 MXU operand dtype

    # In-kernel bf16 casts of the activations (hidden under the pipeline).
    mx = main_x_ref[...].astype(bdt)
    ax = aux_x_ref[...].astype(bdt)

    # ---- main encoder: main_h = relu(main_x @ We + be), f32 accumulate ----
    main_h = jnp.maximum(
        jnp.dot(mx, we_ref[...], preferred_element_type=f32) + be_ref[...], 0.0
    ).astype(bdt)

    # ---- fused [predictor L1 | classifier] = relu(main_h @ [Wp1|Wc] + b) ----
    # The split point p_pad is a multiple of 128 -> both slices are free
    # vreg-aligned views.
    hc = jnp.maximum(
        jnp.dot(main_h, wpc_ref[...], preferred_element_type=f32) + bpc_ref[...],
        0.0,
    )
    p1 = hc[:, :p_pad].astype(bdt)     # predictor hidden (padded cols are 0)
    cls = hc[:, p_pad:].astype(bdt)    # classifier output (padded cols are 0)

    # ---- predictor layer 2: main_p = p1 @ Wp2 + bp2 (lane-dense H_pad) ----
    main_p_ref[...] = (
        jnp.dot(p1, wp2_ref[...], preferred_element_type=f32) + bp2_ref[...]
    ).astype(main_p_ref.dtype)

    # ---- fc + softmax over the lane-padded class dim ----
    # Padded class columns carry bias -1e30 (kept in f32) -> exp underflows to
    # exactly 0, so normalization over the real classes is unchanged.
    z = jnp.dot(cls, wfc_ref[...], preferred_element_type=f32) + bfc_ref[...]
    z = z - jnp.max(z, axis=-1, keepdims=True)
    e = jnp.exp(z)
    inv = pl.reciprocal(jnp.sum(e, axis=-1, keepdims=True), approx=True)
    logits_ref[...] = (e * inv).astype(logits_ref.dtype)

    # ---- aux encoder (frozen; detach/no_grad are forward no-ops) ----
    aux_h_ref[...] = jnp.maximum(
        jnp.dot(ax, wea_ref[...], preferred_element_type=f32) + bea_ref[...], 0.0
    ).astype(aux_h_ref.dtype)


# --------------------------------------------------------------------------- #
# One-time parameter preprocessing (fusion, lane padding, bf16 MXU casts)
# --------------------------------------------------------------------------- #
def prepare_params(params):
    f32, bf16 = jnp.float32, jnp.bfloat16
    H = params["we"].shape[1]
    P = params["wp1"].shape[1]
    C = params["wc"].shape[1]
    NCLS = params["wfc"].shape[1]
    D_aux = params["wea"].shape[0]

    H_pad = _pad_to(max(H, 128), 128)
    P_pad = _pad_to(max(P, 128), 128)
    C_pad = _pad_to(max(C, 128), 128)
    N_pad = _pad_to(max(NCLS, 128), 128)

    def padw(w, rows, cols):
        return jnp.pad(w, ((0, rows - w.shape[0]), (0, cols - w.shape[1])))

    we = params["we"].astype(bf16)                                  # (D_in, H)
    be = params["be"].astype(f32)                                   # (1, H)
    # Fused [Wp1 | Wc]; each head padded to a 128 multiple -> lane-aligned split.
    wpc = jnp.concatenate(
        [padw(params["wp1"], H, P_pad), padw(params["wc"], H, C_pad)], axis=1
    ).astype(bf16)                                                  # (H, P_pad+C_pad)
    bpc = jnp.concatenate(
        [padw(params["bp1"], 1, P_pad), padw(params["bc"], 1, C_pad)], axis=1
    ).astype(f32)
    wp2 = padw(params["wp2"], P_pad, H_pad).astype(bf16)            # (P_pad, H_pad)
    bp2 = padw(params["bp2"], 1, H_pad).astype(f32)
    wfc = padw(params["wfc"], C_pad, N_pad).astype(bf16)            # (C_pad, N_pad)
    bfc = jnp.pad(
        params["bfc"], ((0, 0), (0, N_pad - NCLS)), constant_values=-1e30
    ).astype(f32)                                                   # MUST stay f32
    wea = padw(params["wea"], D_aux, H_pad).astype(bf16)            # (D_aux, H_pad)
    bea = padw(params["bea"], 1, H_pad).astype(f32)

    weights = (we, be, wpc, bpc, wp2, bp2, wfc, bfc, wea, bea)
    return weights, _Meta(h=H, ncls=NCLS, p_pad=P_pad)


# --------------------------------------------------------------------------- #
# Forward wrapper (jit-able; only per-call work is batch padding + the kernel)
# --------------------------------------------------------------------------- #
def bld_forward(main_x, aux_x, weights, meta, *, tb=None):
    f32 = jnp.float32
    B, D_in = main_x.shape
    D_aux = aux_x.shape[1]
    (we, be, wpc, bpc, wp2, bp2, wfc, bfc, wea, bea) = weights
    H_pad = wp2.shape[1]
    N_pad = wfc.shape[1]

    # ---- generation-aware batch tiling: one tile per TensorCore ----
    def nbytes(a):
        return a.size * jnp.dtype(a.dtype).itemsize

    w_bytes = sum(nbytes(w) for w in weights)
    # Per-row activation bytes (f32 inputs + three lane-dense f32 outputs),
    # double-buffered by the grid pipeline.
    row_bytes = 2 * 4 * (D_in + D_aux + 2 * H_pad + N_pad)
    budget = int(0.75 * _VMEM_CAP) - 2 * w_bytes - (4 << 20)
    max_tb = max(8, (budget // max(row_bytes, 1)) // 8 * 8)

    if tb is None:
        tb = -(-B // _NUM_TC)            # whole batch on 1-TC chips, B/2 on 2-TC
    tb = max(8, min(_pad_to(tb, 8), max_tb))
    Bp = _pad_to(B, tb)
    if Bp != B:
        main_x = jnp.pad(main_x, ((0, Bp - B), (0, 0)))
        aux_x = jnp.pad(aux_x, ((0, Bp - B), (0, 0)))

    # VMEM limit from the actual footprint (no double-hedging), capped to 90%
    # of the device's physical VMEM.
    est = 2 * w_bytes + tb * row_bytes + (4 << 20)
    vmem_limit = int(min(max(est, 16 << 20), int(0.9 * _VMEM_CAP)))

    kernel = functools.partial(_bld_kernel, p_pad=meta.p_pad)

    def act_spec(feat):
        return pl.BlockSpec((tb, feat), lambda i: (i, 0))

    def w_spec(shape):
        # Grid-invariant block: constant index_map -> never re-fetched across
        # grid steps; weights are tiny so default buffering costs ~nothing.
        return pl.BlockSpec(shape, lambda i: (0, 0))

    grid_spec = pltpu.PrefetchScalarGridSpec(
        num_scalar_prefetch=0,
        grid=(Bp // tb,),
        in_specs=[act_spec(D_in), act_spec(D_aux)]
        + [w_spec(w.shape) for w in weights],
        out_specs=(act_spec(H_pad), act_spec(H_pad), act_spec(N_pad)),
    )

    main_p, aux_h, logits = pl.pallas_call(
        kernel,
        out_shape=(
            jax.ShapeDtypeStruct((Bp, H_pad), f32),   # main_p (lane-dense)
            jax.ShapeDtypeStruct((Bp, H_pad), f32),   # aux_h  (lane-dense)
            jax.ShapeDtypeStruct((Bp, N_pad), f32),   # logits (lane-dense)
        ),
        grid_spec=grid_spec,
        compiler_params=pltpu.CompilerParams(
            dimension_semantics=("parallel",),
            vmem_limit_bytes=vmem_limit,
        ),
    )(main_x, aux_x, *weights)

    return main_p[:B, : meta.h], aux_h[:B, : meta.h], logits[:B, : meta.ncls]


# --------------------------------------------------------------------------- #
# Deterministic parameter construction (PyTorch-Linear-like init)
# --------------------------------------------------------------------------- #
def _init_linear(key, fan_in, fan_out):
    kw, kb = jax.random.split(key)
    bound = 1.0 / jnp.sqrt(float(fan_in))
    w = jax.random.uniform(kw, (fan_in, fan_out), jnp.float32, -bound, bound)
    b = jax.random.uniform(kb, (1, fan_out), jnp.float32, -bound, bound)
    return w, b


def make_params(key, d_in, hidden, pred_hidden, cls_hidden, n_classes):
    keys = jax.random.split(key, 6)
    we, be = _init_linear(keys[0], d_in, hidden)        # main encoder
    wp1, bp1 = _init_linear(keys[1], hidden, pred_hidden)
    wp2, bp2 = _init_linear(keys[2], pred_hidden, hidden)
    wc, bc = _init_linear(keys[3], hidden, cls_hidden)
    wfc, bfc = _init_linear(keys[4], cls_hidden, n_classes)
    # aux encoder: deepcopy + reset_parameters => same shapes, independent init.
    wea, bea = _init_linear(keys[5], d_in, hidden)
    return dict(we=we, be=be, wp1=wp1, bp1=bp1, wp2=wp2, bp2=bp2,
                wc=wc, bc=bc, wfc=wfc, bfc=bfc, wea=wea, bea=bea)


if __name__ == "__main__":
    B, D_IN, H, P_HID, C_HID, NCLS = 256, 16, 32, 32, 32, 10

    root = jax.random.PRNGKey(0)
    k_main, k_aux, k_params = jax.random.split(root, 3)

    main_x = jax.random.normal(k_main, (B, D_IN), jnp.float32)
    aux_x = jax.random.normal(k_aux, (B, D_IN), jnp.float32)
    params = make_params(k_params, D_IN, H, P_HID, C_HID, NCLS)

    weights, meta = prepare_params(params)          # one-time preprocessing
    fwd = jax.jit(functools.partial(bld_forward, meta=meta))

    main_p, aux_h, logits = fwd(main_x, aux_x, weights)
    jax.block_until_ready((main_p, aux_h, logits))

    # ---- reference check vs. plain JAX with the same bf16 MXU casts ----
    def ref(mx, ax, p):
        bf16 = jnp.bfloat16

        def lin(x, w, b):
            return jnp.dot(x.astype(bf16), w.astype(bf16),
                           preferred_element_type=jnp.float32) + b

        relu = lambda t: jnp.maximum(t, 0.0)
        mh = relu(lin(mx, p["we"], p["be"]))
        mp = lin(relu(lin(mh, p["wp1"], p["bp1"])), p["wp2"], p["bp2"])
        cls = relu(lin(mh, p["wc"], p["bc"]))
        lg = jax.nn.softmax(lin(cls, p["wfc"], p["bfc"]), axis=-1)
        ah = relu(lin(ax, p["wea"], p["bea"]))
        return mp, ah, lg

    r_mp, r_ah, r_lg = ref(main_x, aux_x, params)
    assert main_p.shape == (B, H) and aux_h.shape == (B, H)
    assert logits.shape == (B, NCLS)
    assert jnp.allclose(main_p, r_mp, atol=1e-2, rtol=1e-2)
    assert jnp.allclose(aux_h, r_ah, atol=1e-2, rtol=1e-2)
    assert jnp.allclose(logits, r_lg, atol=1e-2, rtol=1e-2)
    assert jnp.allclose(jnp.sum(logits, axis=-1), 1.0, atol=1e-2)

    print("KERNEL_OK")
</pallas_src>

<mosaic_0001>
module attributes {stable_mosaic.version = 11 : i64} {
  func.func @_bld_kernel(%arg0: i32, %arg1: memref<256x16xf32, #tpu.memory_space<vmem>>, %arg2: memref<256x16xf32, #tpu.memory_space<vmem>>, %arg3: memref<16x32xbf16, #tpu.memory_space<vmem>>, %arg4: memref<1x32xf32, #tpu.memory_space<vmem>>, %arg5: memref<32x256xbf16, #tpu.memory_space<vmem>>, %arg6: memref<1x256xf32, #tpu.memory_space<vmem>>, %arg7: memref<128x128xbf16, #tpu.memory_space<vmem>>, %arg8: memref<1x128xf32, #tpu.memory_space<vmem>>, %arg9: memref<128x128xbf16, #tpu.memory_space<vmem>>, %arg10: memref<1x128xf32, #tpu.memory_space<vmem>>, %arg11: memref<16x128xbf16, #tpu.memory_space<vmem>>, %arg12: memref<1x128xf32, #tpu.memory_space<vmem>>, %arg13: memref<256x128xf32, #tpu.memory_space<vmem>>, %arg14: memref<256x128xf32, #tpu.memory_space<vmem>>, %arg15: memref<256x128xf32, #tpu.memory_space<vmem>>) attributes {dimension_semantics = [#tpu.dimension_semantics<parallel>], iteration_bounds = array<i64: 1>, scalar_prefetch = 0 : i64, scratch_operands = 0 : i64, tpu.core_type = #tpu.core_type<tc>, window_params = [{transform_indices = @transform_0, window_bounds = array<i64: 256, 16>}, {transform_indices = @transform_1, window_bounds = array<i64: 256, 16>}, {pipeline_mode = #tpu.pipeline_mode<synchronous>, transform_indices = @transform_2, window_bounds = array<i64: 16, 32>}, {pipeline_mode = #tpu.pipeline_mode<synchronous>, transform_indices = @transform_3, window_bounds = array<i64: 1, 32>}, {pipeline_mode = #tpu.pipeline_mode<synchronous>, transform_indices = @transform_4, window_bounds = array<i64: 32, 256>}, {pipeline_mode = #tpu.pipeline_mode<synchronous>, transform_indices = @transform_5, window_bounds = array<i64: 1, 256>}, {pipeline_mode = #tpu.pipeline_mode<synchronous>, transform_indices = @transform_6, window_bounds = array<i64: 128, 128>}, {pipeline_mode = #tpu.pipeline_mode<synchronous>, transform_indices = @transform_7, window_bounds = array<i64: 1, 128>}, {pipeline_mode = #tpu.pipeline_mode<synchronous>, transform_indices = @transform_8, window_bounds = array<i64: 128, 128>}, {pipeline_mode = #tpu.pipeline_mode<synchronous>, transform_indices = @transform_9, window_bounds = array<i64: 1, 128>}, {pipeline_mode = #tpu.pipeline_mode<synchronous>, transform_indices = @transform_10, window_bounds = array<i64: 16, 128>}, {pipeline_mode = #tpu.pipeline_mode<synchronous>, transform_indices = @transform_11, window_bounds = array<i64: 1, 128>}, {transform_indices = @transform_12, window_bounds = array<i64: 256, 128>}, {transform_indices = @transform_13, window_bounds = array<i64: 256, 128>}, {transform_indices = @transform_14, window_bounds = array<i64: 256, 128>}]} {
    %c0 = arith.constant 0 : index
    %c0_0 = arith.constant 0 : index
    %0 = vector.load %arg1[%c0, %c0_0] : memref<256x16xf32, #tpu.memory_space<vmem>>, vector<256x16xf32>
    %1 = arith.truncf %0 : vector<256x16xf32> to vector<256x16xbf16>
    %c0_1 = arith.constant 0 : index
    %c0_2 = arith.constant 0 : index
    %2 = vector.load %arg2[%c0_1, %c0_2] : memref<256x16xf32, #tpu.memory_space<vmem>>, vector<256x16xf32>
    %3 = arith.truncf %2 : vector<256x16xf32> to vector<256x16xbf16>
    %c0_3 = arith.constant 0 : index
    %c0_4 = arith.constant 0 : index
    %4 = vector.load %arg3[%c0_3, %c0_4] : memref<16x32xbf16, #tpu.memory_space<vmem>>, vector<16x32xbf16>
    %cst = arith.constant dense<0.000000e+00> : vector<256x32xf32>
    %5 = tpu.matmul %1, %4, %cst {dimension_numbers = #tpu.dot_dimension_numbers<[1], [0], [0], [1], [0, 0, 1, 1], [], []>} : vector<256x16xbf16>, vector<16x32xbf16>, vector<256x32xf32> -> vector<256x32xf32>
    %c0_5 = arith.constant 0 : index
    %c0_6 = arith.constant 0 : index
    %6 = vector.load %arg4[%c0_5, %c0_6] : memref<1x32xf32, #tpu.memory_space<vmem>>, vector<1x32xf32>
    %7 = vector.broadcast %6 : vector<1x32xf32> to vector<256x32xf32>
    %8 = arith.addf %5, %7 : vector<256x32xf32>
    %cst_7 = arith.constant 0.000000e+00 : f32
    %9 = vector.broadcast %cst_7 : f32 to vector<256x32xf32>
    %10 = arith.maximumf %8, %9 : vector<256x32xf32>
    %11 = arith.truncf %10 : vector<256x32xf32> to vector<256x32xbf16>
    %c0_8 = arith.constant 0 : index
    %c0_9 = arith.constant 0 : index
    %12 = vector.load %arg5[%c0_8, %c0_9] : memref<32x256xbf16, #tpu.memory_space<vmem>>, vector<32x256xbf16>
    %cst_10 = arith.constant dense<0.000000e+00> : vector<256x256xf32>
    %13 = tpu.matmul %11, %12, %cst_10 {dimension_numbers = #tpu.dot_dimension_numbers<[1], [0], [0], [1], [0, 0, 1, 1], [], []>} : vector<256x32xbf16>, vector<32x256xbf16>, vector<256x256xf32> -> vector<256x256xf32>
    %c0_11 = arith.constant 0 : index
    %c0_12 = arith.constant 0 : index
    %14 = vector.load %arg6[%c0_11, %c0_12] : memref<1x256xf32, #tpu.memory_space<vmem>>, vector<1x256xf32>
    %15 = vector.broadcast %14 : vector<1x256xf32> to vector<256x256xf32>
    %16 = arith.addf %13, %15 : vector<256x256xf32>
    %cst_13 = arith.constant 0.000000e+00 : f32
    %17 = vector.broadcast %cst_13 : f32 to vector<256x256xf32>
    %18 = arith.maximumf %16, %17 : vector<256x256xf32>
    %19 = vector.extract_strided_slice %18 {offsets = [0, 0], sizes = [256, 128], strides = [1, 1]} : vector<256x256xf32> to vector<256x128xf32>
    %20 = arith.truncf %19 : vector<256x128xf32> to vector<256x128xbf16>
    %21 = vector.extract_strided_slice %18 {offsets = [0, 128], sizes = [256, 128], strides = [1, 1]} : vector<256x256xf32> to vector<256x128xf32>
    %22 = arith.truncf %21 : vector<256x128xf32> to vector<256x128xbf16>
    %c0_14 = arith.constant 0 : index
    %c0_15 = arith.constant 0 : index
    %23 = vector.load %arg7[%c0_14, %c0_15] : memref<128x128xbf16, #tpu.memory_space<vmem>>, vector<128x128xbf16>
    %cst_16 = arith.constant dense<0.000000e+00> : vector<256x128xf32>
    %24 = tpu.matmul %20, %23, %cst_16 {dimension_numbers = #tpu.dot_dimension_numbers<[1], [0], [0], [1], [0, 0, 1, 1], [], []>} : vector<256x128xbf16>, vector<128x128xbf16>, vector<256x128xf32> -> vector<256x128xf32>
    %c0_17 = arith.constant 0 : index
    %c0_18 = arith.constant 0 : index
    %25 = vector.load %arg8[%c0_17, %c0_18] : memref<1x128xf32, #tpu.memory_space<vmem>>, vector<1x128xf32>
    %26 = vector.broadcast %25 : vector<1x128xf32> to vector<256x128xf32>
    %27 = arith.addf %24, %26 : vector<256x128xf32>
    %c0_19 = arith.constant 0 : index
    %c0_20 = arith.constant 0 : index
    %28 = vector.load %arg13[%c0_19, %c0_20] : memref<256x128xf32, #tpu.memory_space<vmem>>, vector<256x128xf32>
    tpu.vector_store %arg13[%c0_19, %c0_20], %27 {strides = array<i32>} : memref<256x128xf32, #tpu.memory_space<vmem>>, vector<256x128xf32>,
    %c0_21 = arith.constant 0 : index
    %c0_22 = arith.constant 0 : index
    %29 = vector.load %arg9[%c0_21, %c0_22] : memref<128x128xbf16, #tpu.memory_space<vmem>>, vector<128x128xbf16>
    %cst_23 = arith.constant dense<0.000000e+00> : vector<256x128xf32>
    %30 = tpu.matmul %22, %29, %cst_23 {dimension_numbers = #tpu.dot_dimension_numbers<[1], [0], [0], [1], [0, 0, 1, 1], [], []>} : vector<256x128xbf16>, vector<128x128xbf16>, vector<256x128xf32> -> vector<256x128xf32>
    %c0_24 = arith.constant 0 : index
    %c0_25 = arith.constant 0 : index
    %31 = vector.load %arg10[%c0_24, %c0_25] : memref<1x128xf32, #tpu.memory_space<vmem>>, vector<1x128xf32>
    %32 = vector.broadcast %31 : vector<1x128xf32> to vector<256x128xf32>
    %33 = arith.addf %30, %32 : vector<256x128xf32>
    %cst_26 = arith.constant dense<0xFF800000> : vector<256xf32>
    %34 = vector.multi_reduction <maximumf>, %33, %cst_26 [1] : vector<256x128xf32> to vector<256xf32>
    %35 = vector.shape_cast %34 : vector<256xf32> to vector<256x1xf32>
    %36 = vector.broadcast %35 : vector<256x1xf32> to vector<256x128xf32>
    %37 = arith.subf %33, %36 : vector<256x128xf32>
    %38 = math.exp %37 : vector<256x128xf32>
    %cst_27 = arith.constant dense<0.000000e+00> : vector<256xf32>
    %39 = vector.multi_reduction <add>, %38, %cst_27 [1] : vector<256x128xf32> to vector<256xf32>
    %40 = vector.shape_cast %39 : vector<256xf32> to vector<256x1xf32>
    %41 = tpu.reciprocal %40 {approx = true} : vector<256x1xf32> -> vector<256x1xf32>
    %42 = vector.broadcast %41 : vector<256x1xf32> to vector<256x128xf32>
    %43 = arith.mulf %38, %42 : vector<256x128xf32>
    %c0_28 = arith.constant 0 : index
    %c0_29 = arith.constant 0 : index
    %44 = vector.load %arg15[%c0_28, %c0_29] : memref<256x128xf32, #tpu.memory_space<vmem>>, vector<256x128xf32>
    tpu.vector_store %arg15[%c0_28, %c0_29], %43 {strides = array<i32>} : memref<256x128xf32, #tpu.memory_space<vmem>>, vector<256x128xf32>,
    %c0_30 = arith.constant 0 : index
    %c0_31 = arith.constant 0 : index
    %45 = vector.load %arg11[%c0_30, %c0_31] : memref<16x128xbf16, #tpu.memory_space<vmem>>, vector<16x128xbf16>
    %cst_32 = arith.constant dense<0.000000e+00> : vector<256x128xf32>
    %46 = tpu.matmul %3, %45, %cst_32 {dimension_numbers = #tpu.dot_dimension_numbers<[1], [0], [0], [1], [0, 0, 1, 1], [], []>} : vector<256x16xbf16>, vector<16x128xbf16>, vector<256x128xf32> -> vector<256x128xf32>
    %c0_33 = arith.constant 0 : index
    %c0_34 = arith.constant 0 : index
    %47 = vector.load %arg12[%c0_33, %c0_34] : memref<1x128xf32, #tpu.memory_space<vmem>>, vector<1x128xf32>
    %48 = vector.broadcast %47 : vector<1x128xf32> to vector<256x128xf32>
    %49 = arith.addf %46, %48 : vector<256x128xf32>
    %cst_35 = arith.constant 0.000000e+00 : f32
    %50 = vector.broadcast %cst_35 : f32 to vector<256x128xf32>
    %51 = arith.maximumf %49, %50 : vector<256x128xf32>
    %c0_36 = arith.constant 0 : index
    %c0_37 = arith.constant 0 : index
    %52 = vector.load %arg14[%c0_36, %c0_37] : memref<256x128xf32, #tpu.memory_space<vmem>>, vector<256x128xf32>
    tpu.vector_store %arg14[%c0_36, %c0_37], %51 {strides = array<i32>} : memref<256x128xf32, #tpu.memory_space<vmem>>, vector<256x128xf32>,
    return
  }
  func.func @transform_0(%arg0: i32) -> (i32, i32) {
    %c0_i32 = arith.constant 0 : i32
    %c0_i32_0 = arith.constant 0 : i32
    return %arg0, %c0_i32 : i32, i32
  }
  func.func @transform_1(%arg0: i32) -> (i32, i32) {
    %c0_i32 = arith.constant 0 : i32
    %c0_i32_0 = arith.constant 0 : i32
    return %arg0, %c0_i32 : i32, i32
  }
  func.func @transform_2(%arg0: i32) -> (i32, i32) {
    %c0_i32 = arith.constant 0 : i32
    %c0_i32_0 = arith.constant 0 : i32
    %c0_i32_1 = arith.constant 0 : i32
    return %c0_i32, %c0_i32_0 : i32, i32
  }
  func.func @transform_3(%arg0: i32) -> (i32, i32) {
    %c0_i32 = arith.constant 0 : i32
    %c0_i32_0 = arith.constant 0 : i32
    %c0_i32_1 = arith.constant 0 : i32
    return %c0_i32, %c0_i32_0 : i32, i32
  }
  func.func @transform_4(%arg0: i32) -> (i32, i32) {
    %c0_i32 = arith.constant 0 : i32
    %c0_i32_0 = arith.constant 0 : i32
    %c0_i32_1 = arith.constant 0 : i32
    return %c0_i32, %c0_i32_0 : i32, i32
  }
  func.func @transform_5(%arg0: i32) -> (i32, i32) {
    %c0_i32 = arith.constant 0 : i32
    %c0_i32_0 = arith.constant 0 : i32
    %c0_i32_1 = arith.constant 0 : i32
    return %c0_i32, %c0_i32_0 : i32, i32
  }
  func.func @transform_6(%arg0: i32) -> (i32, i32) {
    %c0_i32 = arith.constant 0 : i32
    %c0_i32_0 = arith.constant 0 : i32
    %c0_i32_1 = arith.constant 0 : i32
    return %c0_i32, %c0_i32_0 : i32, i32
  }
  func.func @transform_7(%arg0: i32) -> (i32, i32) {
    %c0_i32 = arith.constant 0 : i32
    %c0_i32_0 = arith.constant 0 : i32
    %c0_i32_1 = arith.constant 0 : i32
    return %c0_i32, %c0_i32_0 : i32, i32
  }
  func.func @transform_8(%arg0: i32) -> (i32, i32) {
    %c0_i32 = arith.constant 0 : i32
    %c0_i32_0 = arith.constant 0 : i32
    %c0_i32_1 = arith.constant 0 : i32
    return %c0_i32, %c0_i32_0 : i32, i32
  }
  func.func @transform_9(%arg0: i32) -> (i32, i32) {
    %c0_i32 = arith.constant 0 : i32
    %c0_i32_0 = arith.constant 0 : i32
    %c0_i32_1 = arith.constant 0 : i32
    return %c0_i32, %c0_i32_0 : i32, i32
  }
  func.func @transform_10(%arg0: i32) -> (i32, i32) {
    %c0_i32 = arith.constant 0 : i32
    %c0_i32_0 = arith.constant 0 : i32
    %c0_i32_1 = arith.constant 0 : i32
    return %c0_i32, %c0_i32_0 : i32, i32
  }
  func.func @transform_11(%arg0: i32) -> (i32, i32) {
    %c0_i32 = arith.constant 0 : i32
    %c0_i32_0 = arith.constant 0 : i32
    %c0_i32_1 = arith.constant 0 : i32
    return %c0_i32, %c0_i32_0 : i32, i32
  }
  func.func @transform_12(%arg0: i32) -> (i32, i32) {
    %c0_i32 = arith.constant 0 : i32
    %c0_i32_0 = arith.constant 0 : i32
    return %arg0, %c0_i32 : i32, i32
  }
  func.func @transform_13(%arg0: i32) -> (i32, i32) {
    %c0_i32 = arith.constant 0 : i32
    %c0_i32_0 = arith.constant 0 : i32
    return %arg0, %c0_i32 : i32, i32
  }
  func.func @transform_14(%arg0: i32) -> (i32, i32) {
    %c0_i32 = arith.constant 0 : i32
    %c0_i32_0 = arith.constant 0 : i32
    return %arg0, %c0_i32 : i32, i32
  }
}

</mosaic_0001>

<bundles_post_ra>
// kernel: bld_forward.1
= control target key start
LH: loop header
LB: loop body
LE: loop exit
PB: predicated region body
PF: predicated region fallthrough
CT: control target
= control target key end

     0   :  { %vm156_vm0 = vcmask 130048   ;;  %v2377_v53 = vmov 0   ;;  %vm450_vm1 = vcmask 261120   ;;  %s3577_s2 = inlined_call_operand.vmem [shape: bf16[16,32], index: 2, kind: input, shape index: {}]   ;;  %s3578_s0 = inlined_call_operand.vmem [shape: f32[256,16], index: 0, kind: input, shape index: {}]   ;;  %s3579_s4 = inlined_call_operand.vmem [shape: bf16[32,256], index: 4, kind: input, shape index: {}]   ;;  %s3580_s3 = inlined_call_operand.vmem [shape: f32[1,32], index: 3, kind: input, shape index: {}]   ;;  %s3581_s6 = inlined_call_operand.vmem [shape: bf16[128,128], index: 6, kind: input, shape index: {}]   ;;  %s3582_s8 = inlined_call_operand.vmem [shape: bf16[128,128], index: 8, kind: input, shape index: {}]   ;;  %s3583_s5 = inlined_call_operand.vmem [shape: f32[1,256], index: 5, kind: input, shape index: {}]   ;;  %s3584_s10 = inlined_call_operand.vmem [shape: bf16[16,128], index: 10, kind: input, shape index: {}]   ;;  %s3585_s7 = inlined_call_operand.vmem [shape: f32[1,128], index: 7, kind: input, shape index: {}]   ;;  %s3586_s12 = inlined_call_operand.vmem [shape: f32[256,128], index: 12, kind: output, shape index: {0}]   ;;  %s3587_s1 = inlined_call_operand.vmem [shape: f32[256,16], index: 1, kind: input, shape index: {}]   ;;  %s3588_s9 = inlined_call_operand.vmem [shape: f32[1,128], index: 9, kind: input, shape index: {}]   ;;  %s3589_s11 = inlined_call_operand.vmem [shape: f32[1,128], index: 11, kind: input, shape index: {}]   ;;  %s3590_s13 = inlined_call_operand.vmem [shape: f32[256,128], index: 13, kind: output, shape index: {1}]   ;;  %s3591_s14 = inlined_call_operand.vmem [shape: f32[256,128], index: 14, kind: output, shape index: {2}]  }
   0x1   :  { %v2225_v0 = vld [vmem:[%s3577_s2] sm:$0xff]   ;;  %v46_v2 = vld [vmem:[%s3578_s0 + $0x8] sm:$0xff]  ;;  %v47_v3 = vld [vmem:[%s3578_s0 + $0x10] sm:$0xff]  ;;  %531 = vmatprep.mubr.bf16.mxu1 %v2377_v53 }
   0x2   :  { %v45_v1 = vld [vmem:[%s3578_s0] sm:$0xff]  ;;  %2060 = vmatprep.subr.bf16.mxu0 %v2225_v0  ;;  %v48_v5 = vld [vmem:[%s3578_s0 + $0x18] sm:$0xff]  ;;  %v50_v7 = vld [vmem:[%s3578_s0 + $0x28] sm:$0xff] }
   0x3   :  { %v77_v4 = vpack.c.bf16 %v46_v2, %v45_v1  ;;  %v49_v6 = vld [vmem:[%s3578_s0 + $0x20] sm:$0xff]  ;;  %2061 = vmatpush3.bf16.msra.mxu0 %v2225_v0  ;;  %v78_v8 = vpack.c.bf16 %v48_v5, %v47_v3  ;;  %v51_v10 = vld [vmem:[%s3578_s0 + $0x30] sm:$0xff]  ;;  %v52_v11 = vld [vmem:[%s3578_s0 + $0x38] sm:$0xff] }
   0x4   :  { %v79_v9 = vpack.c.bf16 %v50_v7, %v49_v6  ;;  %v53_v12 = vld [vmem:[%s3578_s0 + $0x40] sm:$0xff]  ;;  %v54_v13 = vld [vmem:[%s3578_s0 + $0x48] sm:$0xff]  ;;  %v80_v14 = vpack.c.bf16 %v52_v11, %v51_v10  ;;  %v55_v16 = vld [vmem:[%s3578_s0 + $0x50] sm:$0xff] }
   0x5   :  { %2062 = vmatprep.mubr.msk.bf16.mxu0 %vm156_vm0, %v77_v4  ;;  %v81_v15 = vpack.c.bf16 %v54_v13, %v53_v12  ;;  %v56_v17 = vld [vmem:[%s3578_s0 + $0x58] sm:$0xff]  ;;  %v57_v18 = vld [vmem:[%s3578_s0 + $0x60] sm:$0xff]  ;;  %v58_v19 = vld [vmem:[%s3578_s0 + $0x68] sm:$0xff] }
   0x6   :  { %2063 = vmatmul.mubr.msk.bf16.vlgmr.msra.gmra.mrb[0].mxu0 %vm156_vm0, %v78_v8  ;;  %v82_v20 = vpack.c.bf16 %v56_v17, %v55_v16  ;;  %v83_v21 = vpack.c.bf16 %v58_v19, %v57_v18  ;;  %v59_v22 = vld [vmem:[%s3578_s0 + $0x70] sm:$0xff]  ;;  %v60_v23 = vld [vmem:[%s3578_s0 + $0x78] sm:$0xff]  ;;  %v61_v24 = vld [vmem:[%s3578_s0 + $0x80] sm:$0xff] }
   0x7   :  { %2066 = vmatprep.mubr.msk.bf16.mxu0 %vm156_vm0, %v79_v9  ;;  %v62_v25 = vld [vmem:[%s3578_s0 + $0x88] sm:$0xff]  ;;  %v84_v26 = vpack.c.bf16 %v60_v23, %v59_v22  ;;  %v63_v28 = vld [vmem:[%s3578_s0 + $0x90] sm:$0xff]  ;;  %v64_v29 = vld [vmem:[%s3578_s0 + $0x98] sm:$0xff] }
   0x8   :  { %v85_v27 = vpack.c.bf16 %v62_v25, %v61_v24  ;;  %v65_v30 = vld [vmem:[%s3578_s0 + $0xa0] sm:$0xff]  ;;  %v66_v31 = vld [vmem:[%s3578_s0 + $0xa8] sm:$0xff]  ;;  %v86_v32 = vpack.c.bf16 %v64_v29, %v63_v28  ;;  %v67_v34 = vld [vmem:[%s3578_s0 + $0xb0] sm:$0xff] }
   0x9   :  { %v87_v33 = vpack.c.bf16 %v66_v31, %v65_v30  ;;  %v68_v35 = vld [vmem:[%s3578_s0 + $0xb8] sm:$0xff]  ;;  %v69_v36 = vld [vmem:[%s3578_s0 + $0xc0] sm:$0xff]  ;;  %v70_v37 = vld [vmem:[%s3578_s0 + $0xc8] sm:$0xff] }
   0xa   :  { %v88_v38 = vpack.c.bf16 %v68_v35, %v67_v34  ;;  %v89_v39 = vpack.c.bf16 %v70_v37, %v69_v36  ;;  %v71_v40 = vld [vmem:[%s3578_s0 + $0xd0] sm:$0xff]  ;;  %v72_v41 = vld [vmem:[%s3578_s0 + $0xd8] sm:$0xff]  ;;  %v73_v42 = vld [vmem:[%s3578_s0 + $0xe0] sm:$0xff] }
   0xb   :  { %v74_v43 = vld [vmem:[%s3578_s0 + $0xe8] sm:$0xff]  ;;  %v90_v44 = vpack.c.bf16 %v72_v41, %v71_v40  ;;  %v75_v46 = vld [vmem:[%s3578_s0 + $0xf0] sm:$0xff]  ;;  %v76_v47 = vld [vmem:[%s3578_s0 + $0xf8] sm:$0xff] }
   0xc   :  { %v91_v45 = vpack.c.bf16 %v74_v43, %v73_v42  ;;  %v92_v48 = vpack.c.bf16 %v76_v47, %v75_v46  ;;  %v2226_v49 = vld [vmem:[%s3579_s4 + $0x4] ss:$8 sps:$4 sm:$0xff]   ;;  %v2228_v50 = vld [vmem:[%s3579_s4] ss:$8 sps:$4 sm:$0xff]   ;;  %v2229_v51 = vld [vmem:[%s3579_s4 + $0x14] ss:$8 sps:$4 sm:$0xff]  }
   0xd   :  { %499 = vmatprep.subr.bf16.mxu1 %v2226_v49  ;;  %v2231_v52 = vld [vmem:[%s3579_s4 + $0x10] ss:$8 sps:$4 sm:$0xff]   ;;  %v2584_v54 = vld [vmem:[%s3580_s3] ss:$0 sm:$0xff]  ;;  %v2233_v2 = vld [vmem:[%s3581_s6 + $0x8] sm:$0xff]  }
   0xe   :  { %2067 = vmatmul.mubr.msk.bf16.gmra.mrb[4].mxu0 %vm156_vm0, %v80_v14  ;;  %500 = vmatpush1.bf16.msra.mxu1 %v2228_v50  ;;  %v2232_v0 = vld [vmem:[%s3581_s6] sm:$0xff]   ;;  %v2234_v8 = vld [vmem:[%s3581_s6 + $0x10] sm:$0xff]   ;;  %v2235_v18 = vld [vmem:[%s3581_s6 + $0x18] sm:$0xff]  }
   0xf   :  { %2070 = vmatprep.mubr.msk.bf16.mxu0 %vm156_vm0, %v81_v15  ;;  %501 = vmatprep.subr.bf16.mxu1 %v2229_v51 }
  0x10   :  { %2094 = vmatprep.subr.bf16.mxu0 %v2232_v0 }
  0x11   :  { %2095 = vmatpush3.bf16.msra.mxu0 %v2232_v0 }
  0x12   :  { %502 = vmatpush1.bf16.msra.mxu1 %v2231_v52  ;;  %2096 = vmatprep.subr.bf16.mxu0 %v2233_v2 }
  0x15   :  { %2097 = vmatpush3.bf16.msra.mxu0 %v2233_v2 }
  0x16   :  { %2071 = vmatmul.mubr.msk.bf16.gmra.mrb[8].mxu0 %vm156_vm0, %v82_v20  ;;  %2098 = vmatprep.subr.bf16.mxu0 %v2234_v8 }
  0x17   :  { %2074 = vmatprep.mubr.msk.bf16.mxu0 %vm156_vm0, %v83_v21 }
  0x19   :  { %2099 = vmatpush3.bf16.msra.mxu0 %v2234_v8 }
  0x1a   :  { %2100 = vmatprep.subr.bf16.mxu0 %v2235_v18 }
  0x1d   :  { %2101 = vmatpush3.bf16.msra.mxu0 %v2235_v18 }
  0x1e   :  { %2075 = vmatmul.mubr.msk.bf16.gmra.mrb[12].mxu0 %vm156_vm0, %v84_v26 }
  0x1f   :  { %2078 = vmatprep.mubr.msk.bf16.mxu0 %vm156_vm0, %v85_v27 }
  0x26   :  { %2079 = vmatmul.mubr.msk.bf16.gmra.mrb[16].mxu0 %vm156_vm0, %v86_v32 }
  0x27   :  { %2082 = vmatprep.mubr.msk.bf16.mxu0 %vm156_vm0, %v87_v33 }
  0x2e   :  { %2083 = vmatmul.mubr.msk.bf16.gmra.mrb[20].mxu0 %vm156_vm0, %v88_v38 }
  0x2f   :  { %2086 = vmatprep.mubr.msk.bf16.mxu0 %vm156_vm0, %v89_v39 }
  0x36   :  { %2087 = vmatmul.mubr.msk.bf16.gmra.mrb[24].mxu0 %vm156_vm0, %v90_v44 }
  0x37   :  { %2090 = vmatprep.mubr.msk.bf16.mxu0 %vm156_vm0, %v91_v45 }
  0x3e   :  { %2091 = vmatmul.mubr.msk.bf16.gmra.mrb[28].mxu0 %vm156_vm0, %v92_v48 }
  0xd9   :  { %v2064_v55 = vpop.f32.mrb[0].mxu0 }
  0xda   :  { %v248_v56 = vadd.f32 %v2064_v55, %v2584_v54  ;;  %v239_v57 = vpop.f32.mrb[1].mxu0 }
  0xdb   :  { %v240_v58 = vadd.f32 %v2584_v54, %v239_v57  ;;  %v2065_v59 = vpop.f32.mrb[2].mxu0 }
  0xdc   :  { %v251_v60 = vadd.f32 %v2065_v59, %v2584_v54  ;;  %v242_v61 = vpop.f32.mrb[3].mxu0  ;;  %v368_v62 = vmax.f32 %v248_v56, 0.0 }
  0xdd   :  { %v243_v63 = vadd.f32 %v2584_v54, %v242_v61  ;;  %v366_v3 = vmax.f32 %v240_v58, 0.0 }
  0xde   :  { %v369_v1 = vmax.f32 %v251_v60, 0.0 }
  0xdf   :  { %v367_v4 = vmax.f32 %v243_v63, 0.0 }
  0xe0   :  { %v399_v5 = vpack.c.bf16 %v369_v1, %v368_v62 }
  0xe1   :  { %v398_v6 = vpack.c.bf16 %v367_v4, %v366_v3  ;;  %v2068_v7 = vpop.f32.mrb[4].mxu0 }
  0xe2   :  { %v264_v9 = vadd.f32 %v2068_v7, %v2584_v54  ;;  %v255_v10 = vpop.f32.mrb[5].mxu0 }
  0xe3   :  { %1926 = vmatmul.mubr.msk.bf16.vlgmr.msra.gmra.mrb[0].mxu1 %vm450_vm1, %v398_v6  ;;  %v256_v11 = vadd.f32 %v2584_v54, %v255_v10  ;;  %v2069_v12 = vpop.f32.mrb[6].mxu0 }
  0xe4   :  { %v372_v13 = vmax.f32 %v264_v9, 0.0  ;;  %v267_v14 = vadd.f32 %v2069_v12, %v2584_v54  ;;  %v258_v15 = vpop.f32.mrb[7].mxu0  ;;  %541 = vmatprep.mubr.bf16.mxu1 %v2377_v53 }
  0xe5   :  { %v370_v16 = vmax.f32 %v256_v11, 0.0  ;;  %v259_v17 = vadd.f32 %v2584_v54, %v258_v15 }
  0xe6   :  { %v373_v19 = vmax.f32 %v267_v14, 0.0 }
  0xe7   :  { %v371_v20 = vmax.f32 %v259_v17, 0.0 }
  0xe8   :  { %v401_v21 = vpack.c.bf16 %v373_v19, %v372_v13 }
  0xe9   :  { %v400_v22 = vpack.c.bf16 %v371_v20, %v370_v16  ;;  %v2072_v23 = vpop.f32.mrb[8].mxu0 }
  0xea   :  { %v280_v24 = vadd.f32 %v2072_v23, %v2584_v54  ;;  %v271_v25 = vpop.f32.mrb[9].mxu0 }
  0xeb   :  { %1927 = vmatmul.mubr.msk.bf16.gmra.mrb[4].mxu1 %vm450_vm1, %v399_v5  ;;  %v272_v26 = vadd.f32 %v2584_v54, %v271_v25  ;;  %v2073_v27 = vpop.f32.mrb[10].mxu0 }
  0xec   :  { %551 = vmatprep.mubr.bf16.mxu1 %v2377_v53  ;;  %v376_v28 = vmax.f32 %v280_v24, 0.0  ;;  %v283_v29 = vadd.f32 %v2073_v27, %v2584_v54  ;;  %v274_v30 = vpop.f32.mrb[11].mxu0 }
  0xed   :  { %v374_v31 = vmax.f32 %v272_v26, 0.0  ;;  %v275_v32 = vadd.f32 %v2584_v54, %v274_v30 }
  0xee   :  { %v377_v33 = vmax.f32 %v283_v29, 0.0 }
  0xef   :  { %v375_v34 = vmax.f32 %v275_v32, 0.0 }
  0xf0   :  { %v403_v35 = vpack.c.bf16 %v377_v33, %v376_v28 }
  0xf1   :  { %v402_v36 = vpack.c.bf16 %v375_v34, %v374_v31  ;;  %v2076_v37 = vpop.f32.mrb[12].mxu0 }
  0xf2   :  { %v296_v38 = vadd.f32 %v2076_v37, %v2584_v54  ;;  %v287_v39 = vpop.f32.mrb[13].mxu0 }
  0xf3   :  { %1928 = vmatmul.mubr.msk.bf16.gmra.mrb[8].mxu1 %vm450_vm1, %v400_v22  ;;  %v288_v40 = vadd.f32 %v2584_v54, %v287_v39  ;;  %v2077_v41 = vpop.f32.mrb[14].mxu0 }
  0xf4   :  { %561 = vmatprep.mubr.bf16.mxu1 %v2377_v53  ;;  %v380_v42 = vmax.f32 %v296_v38, 0.0  ;;  %v299_v43 = vadd.f32 %v2077_v41, %v2584_v54  ;;  %v290_v44 = vpop.f32.mrb[15].mxu0 }
  0xf5   :  { %v378_v45 = vmax.f32 %v288_v40, 0.0  ;;  %v291_v46 = vadd.f32 %v2584_v54, %v290_v44 }
  0xf6   :  { %v381_v47 = vmax.f32 %v299_v43, 0.0 }
  0xf7   :  { %v379_v48 = vmax.f32 %v291_v46, 0.0  ;;  %v2238_v46 = vld [vmem:[%s3581_s6 + $0x30] sm:$0xff]  }
  0xf8   :  { %v2620_v49 = vpack.c.bf16 %v381_v47, %v380_v42  ;;  %v2239_v47 = vld [vmem:[%s3581_s6 + $0x38] sm:$0xff]  }
  0xf9   :  { %v404_v50 = vpack.c.bf16 %v379_v48, %v378_v45  ;;  %v2080_v51 = vpop.f32.mrb[16].mxu0  ;;  %v2237_v45 = vld [vmem:[%s3581_s6 + $0x28] sm:$0xff]   ;;  %v2240_v48 = vld [vmem:[%s3582_s8] sm:$0xff]  }
  0xfa   :  { %v312_v52 = vadd.f32 %v2080_v51, %v2584_v54  ;;  %v303_v55 = vpop.f32.mrb[17].mxu0 }
  0xfb   :  { %1929 = vmatmul.mubr.msk.bf16.gmra.mrb[12].mxu1 %vm450_vm1, %v401_v21  ;;  %v304_v56 = vadd.f32 %v2584_v54, %v303_v55  ;;  %v2081_v57 = vpop.f32.mrb[18].mxu0 }
  0xfc   :  { %571 = vmatprep.mubr.bf16.mxu1 %v2377_v53  ;;  %v384_v58 = vmax.f32 %v312_v52, 0.0  ;;  %v315_v59 = vadd.f32 %v2081_v57, %v2584_v54  ;;  %v306_v60 = vpop.f32.mrb[19].mxu0  ;;  %v418_v52 = vld [vmem:[%s3583_s5] sm:$0x3] }
  0xfd   :  { %v382_v61 = vmax.f32 %v304_v56, 0.0  ;;  %v307_v62 = vadd.f32 %v2584_v54, %v306_v60 }
  0xfe   :  { %v385_v63 = vmax.f32 %v315_v59, 0.0 }
  0xff   :  { %v383_v0 = vmax.f32 %v307_v62, 0.0 }
 0x100   :  { %v407_v1 = vpack.c.bf16 %v385_v63, %v384_v58 }
 0x101   :  { %v406_v2 = vpack.c.bf16 %v383_v0, %v382_v61  ;;  %v2084_v3 = vpop.f32.mrb[20].mxu0 }
 0x102   :  { %v328_v4 = vadd.f32 %v2084_v3, %v2584_v54  ;;  %v319_v5 = vpop.f32.mrb[21].mxu0 }
 0x103   :  { %1930 = vmatmul.mubr.msk.bf16.gmra.mrb[16].mxu1 %vm450_vm1, %v402_v36  ;;  %v320_v6 = vadd.f32 %v2584_v54, %v319_v5  ;;  %v2085_v7 = vpop.f32.mrb[22].mxu0 }
 0x104   :  { %581 = vmatprep.mubr.bf16.mxu1 %v2377_v53  ;;  %v388_v8 = vmax.f32 %v328_v4, 0.0  ;;  %v331_v9 = vadd.f32 %v2085_v7, %v2584_v54  ;;  %v322_v10 = vpop.f32.mrb[23].mxu0 }
 0x105   :  { %v386_v11 = vmax.f32 %v320_v6, 0.0  ;;  %v323_v12 = vadd.f32 %v2584_v54, %v322_v10 }
 0x106   :  { %v389_v13 = vmax.f32 %v331_v9, 0.0 }
 0x107   :  { %v387_v14 = vmax.f32 %v323_v12, 0.0 }
 0x108   :  { %v409_v15 = vpack.c.bf16 %v389_v13, %v388_v8 }
 0x109   :  { %v408_v16 = vpack.c.bf16 %v387_v14, %v386_v11  ;;  %v2088_v17 = vpop.f32.mrb[24].mxu0 }
 0x10a   :  { %v344_v18 = vadd.f32 %v2088_v17, %v2584_v54  ;;  %v335_v19 = vpop.f32.mrb[25].mxu0 }
 0x10b   :  { %1931 = vmatmul.mubr.msk.bf16.gmra.mrb[20].mxu1 %vm450_vm1, %v403_v35  ;;  %v336_v20 = vadd.f32 %v2584_v54, %v335_v19  ;;  %v2089_v21 = vpop.f32.mrb[26].mxu0 }
 0x10c   :  { %591 = vmatprep.mubr.bf16.mxu1 %v2377_v53  ;;  %v392_v22 = vmax.f32 %v344_v18, 0.0  ;;  %v347_v23 = vadd.f32 %v2089_v21, %v2584_v54  ;;  %v338_v24 = vpop.f32.mrb[27].mxu0 }
 0x10d   :  { %v390_v25 = vmax.f32 %v336_v20, 0.0  ;;  %v339_v26 = vadd.f32 %v2584_v54, %v338_v24  ;;  %v2241_v20 = vld [vmem:[%s3582_s8 + $0x8] sm:$0xff]  }
 0x10e   :  { %v393_v27 = vmax.f32 %v347_v23, 0.0 }
 0x10f   :  { %v391_v28 = vmax.f32 %v339_v26, 0.0 }
 0x110   :  { %v411_v29 = vpack.c.bf16 %v393_v27, %v392_v22 }
 0x111   :  { %v410_v30 = vpack.c.bf16 %v391_v28, %v390_v25  ;;  %v2092_v31 = vpop.f32.mrb[28].mxu0 }
 0x112   :  { %v360_v32 = vadd.f32 %v2092_v31, %v2584_v54  ;;  %v351_v33 = vpop.f32.mrb[29].mxu0 }
 0x113   :  { %1932 = vmatmul.mubr.msk.bf16.gmra.mrb[24].mxu1 %vm450_vm1, %v404_v50  ;;  %v352_v34 = vadd.f32 %v2584_v54, %v351_v33  ;;  %v2093_v35 = vpop.f32.mrb[30].mxu0 }
 0x114   :  { %601 = vmatprep.mubr.bf16.mxu1 %v2377_v53  ;;  %v396_v36 = vmax.f32 %v360_v32, 0.0  ;;  %v363_v37 = vadd.f32 %v2093_v35, %v2584_v54  ;;  %v354_v38 = vpop.f32.mrb[31].mxu0 }
 0x115   :  { %v394_v39 = vmax.f32 %v352_v34, 0.0  ;;  %v355_v40 = vadd.f32 %v2584_v54, %v354_v38  ;;  %v2236_v54 = vld [vmem:[%s3581_s6 + $0x20] sm:$0xff]  }
 0x116   :  { %v397_v41 = vmax.f32 %v363_v37, 0.0  ;;  %2102 = vmatprep.subr.bf16.mxu0 %v2236_v54 }
 0x117   :  { %v395_v42 = vmax.f32 %v355_v40, 0.0  ;;  %2103 = vmatpush3.bf16.msra.mxu0 %v2236_v54  ;;  %v2244_v54 = vld [vmem:[%s3582_s8 + $0x20] sm:$0xff]  }
 0x118   :  { %v413_v43 = vpack.c.bf16 %v397_v41, %v396_v36  ;;  %2104 = vmatprep.subr.bf16.mxu0 %v2237_v45  ;;  %v2243_v36 = vld [vmem:[%s3582_s8 + $0x18] sm:$0xff]  }
 0x119   :  { %v412_v44 = vpack.c.bf16 %v395_v42, %v394_v39 }
 0x11b   :  { %1933 = vmatmul.mubr.msk.bf16.gmra.mrb[28].mxu1 %vm450_vm1, %v2620_v49  ;;  %2105 = vmatpush3.bf16.msra.mxu0 %v2237_v45  ;;  %v420_v49 = vlaneseq }
 0x11c   :  { %611 = vmatprep.mubr.bf16.mxu1 %v2377_v53  ;;  %2106 = vmatprep.subr.bf16.mxu0 %v2238_v46 }
 0x11d   :  { %v421_v50 = vshrl.u32 %v420_v49, 7 }
 0x11f   :  { %2107 = vmatpush3.bf16.msra.mxu0 %v2238_v46  ;;  %v422_v51 = vsub.s32 0, %v421_v50  ;;  %v426_v55 = vsub.s32 1, %v421_v50 }
 0x120   :  { %2108 = vmatprep.subr.bf16.mxu0 %v2239_v47 }
 0x121   :  { %v2682_v56 = vrot.slane %v418_v52, %v422_v51  ;;  %v2684_v57 = vrot.slane %v418_v52, %v426_v55  ;;  %v2245_v51 = vld [vmem:[%s3582_s8 + $0x28] sm:$0xff]  }
 0x123   :  { %1934 = vmatmul.mubr.msk.bf16.gmra.mrb[32].mxu1 %vm450_vm1, %v406_v2  ;;  %2109 = vmatpush3.bf16.msra.mxu0 %v2239_v47 }
 0x124   :  { %621 = vmatprep.mubr.bf16.mxu1 %v2377_v53  ;;  %2142 = vmatprep.subr.bf16.mxu0 %v2240_v48 }
 0x12b   :  { %1935 = vmatmul.mubr.msk.bf16.gmra.mrb[36].mxu1 %vm450_vm1, %v407_v1 }
 0x12c   :  { %631 = vmatprep.mubr.bf16.mxu1 %v2377_v53 }
 0x133   :  { %1936 = vmatmul.mubr.msk.bf16.gmra.mrb[40].mxu1 %vm450_vm1, %v408_v16 }
 0x134   :  { %641 = vmatprep.mubr.bf16.mxu1 %v2377_v53 }
 0x13b   :  { %1937 = vmatmul.mubr.msk.bf16.gmra.mrb[44].mxu1 %vm450_vm1, %v409_v15 }
 0x13c   :  { %651 = vmatprep.mubr.bf16.mxu1 %v2377_v53 }
 0x143   :  { %1938 = vmatmul.mubr.msk.bf16.gmra.mrb[48].mxu1 %vm450_vm1, %v410_v30 }
 0x144   :  { %661 = vmatprep.mubr.bf16.mxu1 %v2377_v53 }
 0x14b   :  { %1939 = vmatmul.mubr.msk.bf16.gmra.mrb[52].mxu1 %vm450_vm1, %v411_v29  ;;  %v2242_v29 = vld [vmem:[%s3582_s8 + $0x10] sm:$0xff]  }
 0x14c   :  { %671 = vmatprep.mubr.bf16.mxu1 %v2377_v53 }
 0x153   :  { %1940 = vmatmul.mubr.msk.bf16.gmra.mrb[56].mxu1 %vm450_vm1, %v412_v44 }
 0x154   :  { %681 = vmatprep.mubr.bf16.mxu1 %v2377_v53 }
 0x15b   :  { %1941 = vmatmul.mubr.msk.bf16.gmra.mrb[60].mxu1 %vm450_vm1, %v413_v43 }
 0x1b6   :  { %v533_v53 = vpop.f32.mrb[0].mxu1 }
 0x1b7   :  { %v534_v58 = vadd.f32 %v533_v53, %v2682_v56  ;;  %v535_v59 = vpop.f32.mrb[1].mxu1 }
 0x1b8   :  { %v536_v60 = vadd.f32 %v535_v59, %v2684_v57  ;;  %v537_v61 = vpop.f32.mrb[2].mxu1 }
 0x1b9   :  { %v538_v62 = vadd.f32 %v537_v61, %v2682_v56  ;;  %v539_v63 = vpop.f32.mrb[3].mxu1  ;;  %v692_v1 = vmax.f32 %v534_v58, 0.0 }
 0x1ba   :  { %v540_v0 = vadd.f32 %v539_v63, %v2684_v57  ;;  %v693_v3 = vmax.f32 %v536_v60, 0.0  ;;  %v2246_v63 = vld [vmem:[%s3582_s8 + $0x30] sm:$0xff]  }
 0x1bb   :  { %v694_v2 = vmax.f32 %v538_v62, 0.0 }
 0x1bc   :  { %v695_v4 = vmax.f32 %v540_v0, 0.0 }
 0x1bd   :  { %v756_v5 = vpack.c.bf16 %v694_v2, %v692_v1 }
 0x1be   :  { %v2690_v6 = vpack.c.bf16 %v695_v4, %v693_v3  ;;  %v543_v7 = vpop.f32.mrb[4].mxu1 }
 0x1bf   :  { %v544_v8 = vadd.f32 %v543_v7, %v2682_v56  ;;  %v545_v9 = vpop.f32.mrb[5].mxu1  ;;  %2110 = vmatprep.mubr.bf16.mxu0 %v756_v5  ;;  %v2247_v7 = vld [vmem:[%s3582_s8 + $0x38] sm:$0xff]  }
 0x1c0   :  { %v546_v10 = vadd.f32 %v545_v9, %v2684_v57  ;;  %v547_v11 = vpop.f32.mrb[6].mxu1 }
 0x1c1   :  { %v548_v12 = vadd.f32 %v547_v11, %v2682_v56  ;;  %v549_v13 = vpop.f32.mrb[7].mxu1  ;;  %v696_v15 = vmax.f32 %v544_v8, 0.0 }
 0x1c2   :  { %v550_v14 = vadd.f32 %v549_v13, %v2684_v57  ;;  %v697_v17 = vmax.f32 %v546_v10, 0.0 }
 0x1c3   :  { %v698_v16 = vmax.f32 %v548_v12, 0.0 }
 0x1c4   :  { %v699_v18 = vmax.f32 %v550_v14, 0.0 }
 0x1c5   :  { %v757_v19 = vpack.c.bf16 %v698_v16, %v696_v15 }
 0x1c6   :  { %v2699_v21 = vpack.c.bf16 %v699_v18, %v697_v17  ;;  %v553_v22 = vpop.f32.mrb[8].mxu1 }
 0x1c7   :  { %v554_v23 = vadd.f32 %v553_v22, %v2682_v56  ;;  %v555_v24 = vpop.f32.mrb[9].mxu1  ;;  %2111 = vmatmul.mubr.bf16.vlgmr.msra.gmra.mrb[32].mxu0 %v757_v19 }
 0x1c8   :  { %v556_v25 = vadd.f32 %v555_v24, %v2684_v57  ;;  %v557_v26 = vpop.f32.mrb[10].mxu1  ;;  %2143 = vmatpush3.bf16.msra.mxu0 %v2240_v48 }
 0x1c9   :  { %v558_v27 = vadd.f32 %v557_v26, %v2682_v56  ;;  %v559_v28 = vpop.f32.mrb[11].mxu1  ;;  %2144 = vmatprep.subr.bf16.mxu0 %v2241_v20  ;;  %v700_v31 = vmax.f32 %v554_v23, 0.0 }
 0x1ca   :  { %v560_v30 = vadd.f32 %v559_v28, %v2684_v57  ;;  %v701_v33 = vmax.f32 %v556_v25, 0.0 }
 0x1cb   :  { %v702_v32 = vmax.f32 %v558_v27, 0.0 }
 0x1cc   :  { %v703_v34 = vmax.f32 %v560_v30, 0.0  ;;  %2145 = vmatpush3.bf16.msra.mxu0 %v2241_v20 }
 0x1cd   :  { %v758_v35 = vpack.c.bf16 %v702_v32, %v700_v31  ;;  %2146 = vmatprep.subr.bf16.mxu0 %v2242_v29 }
 0x1ce   :  { %v2711_v37 = vpack.c.bf16 %v703_v34, %v701_v33  ;;  %v563_v38 = vpop.f32.mrb[12].mxu1 }
 0x1cf   :  { %v564_v39 = vadd.f32 %v563_v38, %v2682_v56  ;;  %v565_v40 = vpop.f32.mrb[13].mxu1  ;;  %2114 = vmatprep.mubr.bf16.mxu0 %v758_v35 }
 0x1d0   :  { %v566_v41 = vadd.f32 %v565_v40, %v2684_v57  ;;  %v567_v42 = vpop.f32.mrb[14].mxu1  ;;  %2147 = vmatpush3.bf16.msra.mxu0 %v2242_v29 }
 0x1d1   :  { %v568_v43 = vadd.f32 %v567_v42, %v2682_v56  ;;  %v569_v44 = vpop.f32.mrb[15].mxu1  ;;  %2148 = vmatprep.subr.bf16.mxu0 %v2243_v36  ;;  %v704_v46 = vmax.f32 %v564_v39, 0.0 }
 0x1d2   :  { %v570_v45 = vadd.f32 %v569_v44, %v2684_v57  ;;  %v705_v48 = vmax.f32 %v566_v41, 0.0 }
 0x1d3   :  { %v706_v47 = vmax.f32 %v568_v43, 0.0 }
 0x1d4   :  { %v707_v49 = vmax.f32 %v570_v45, 0.0  ;;  %2149 = vmatpush3.bf16.msra.mxu0 %v2243_v36 }
 0x1d5   :  { %v759_v50 = vpack.c.bf16 %v706_v47, %v704_v46  ;;  %2150 = vmatprep.subr.bf16.mxu0 %v2244_v54 }
 0x1d6   :  { %v2723_v52 = vpack.c.bf16 %v707_v49, %v705_v48  ;;  %v573_v55 = vpop.f32.mrb[16].mxu1 }
 0x1d7   :  { %v574_v53 = vadd.f32 %v573_v55, %v2682_v56  ;;  %v575_v58 = vpop.f32.mrb[17].mxu1  ;;  %2115 = vmatmul.mubr.bf16.gmra.mrb[36].mxu0 %v759_v50 }
 0x1d8   :  { %v576_v59 = vadd.f32 %v575_v58, %v2684_v57  ;;  %v577_v60 = vpop.f32.mrb[18].mxu1  ;;  %2151 = vmatpush3.bf16.msra.mxu0 %v2244_v54 }
 0x1d9   :  { %v578_v61 = vadd.f32 %v577_v60, %v2682_v56  ;;  %v579_v62 = vpop.f32.mrb[19].mxu1  ;;  %2152 = vmatprep.subr.bf16.mxu0 %v2245_v51  ;;  %v708_v1 = vmax.f32 %v574_v53, 0.0 }
 0x1da   :  { %v580_v0 = vadd.f32 %v579_v62, %v2684_v57  ;;  %v709_v3 = vmax.f32 %v576_v59, 0.0 }
 0x1db   :  { %v710_v2 = vmax.f32 %v578_v61, 0.0 }
 0x1dc   :  { %v711_v4 = vmax.f32 %v580_v0, 0.0  ;;  %2153 = vmatpush3.bf16.msra.mxu0 %v2245_v51 }
 0x1dd   :  { %v760_v5 = vpack.c.bf16 %v710_v2, %v708_v1  ;;  %2154 = vmatprep.subr.bf16.mxu0 %v2246_v63 }
 0x1de   :  { %v2735_v8 = vpack.c.bf16 %v711_v4, %v709_v3  ;;  %v583_v9 = vpop.f32.mrb[20].mxu1 }
 0x1df   :  { %v584_v10 = vadd.f32 %v583_v9, %v2682_v56  ;;  %v585_v11 = vpop.f32.mrb[21].mxu1  ;;  %2118 = vmatprep.mubr.bf16.mxu0 %v760_v5 }
 0x1e0   :  { %v586_v12 = vadd.f32 %v585_v11, %v2684_v57  ;;  %v587_v13 = vpop.f32.mrb[22].mxu1  ;;  %2155 = vmatpush3.bf16.msra.mxu0 %v2246_v63 }
 0x1e1   :  { %v588_v14 = vadd.f32 %v587_v13, %v2682_v56  ;;  %v589_v15 = vpop.f32.mrb[23].mxu1  ;;  %2156 = vmatprep.subr.bf16.mxu0 %v2247_v7  ;;  %v712_v17 = vmax.f32 %v584_v10, 0.0 }
 0x1e2   :  { %v590_v16 = vadd.f32 %v589_v15, %v2684_v57  ;;  %v713_v19 = vmax.f32 %v586_v12, 0.0 }
 0x1e3   :  { %v714_v18 = vmax.f32 %v588_v14, 0.0 }
 0x1e4   :  { %v715_v20 = vmax.f32 %v590_v16, 0.0  ;;  %2157 = vmatpush3.bf16.msra.mxu0 %v2247_v7 }
 0x1e5   :  { %v761_v22 = vpack.c.bf16 %v714_v18, %v712_v17 }
 0x1e6   :  { %v2741_v23 = vpack.c.bf16 %v715_v20, %v713_v19  ;;  %v593_v24 = vpop.f32.mrb[24].mxu1 }
 0x1e7   :  { %v594_v25 = vadd.f32 %v593_v24, %v2682_v56  ;;  %v595_v26 = vpop.f32.mrb[25].mxu1  ;;  %2119 = vmatmul.mubr.bf16.gmra.mrb[40].mxu0 %v761_v22 }
 0x1e8   :  { %v596_v27 = vadd.f32 %v595_v26, %v2684_v57  ;;  %v597_v28 = vpop.f32.mrb[26].mxu1 }
 0x1e9   :  { %v598_v29 = vadd.f32 %v597_v28, %v2682_v56  ;;  %v599_v30 = vpop.f32.mrb[27].mxu1  ;;  %v716_v32 = vmax.f32 %v594_v25, 0.0 }
 0x1ea   :  { %v600_v31 = vadd.f32 %v599_v30, %v2684_v57  ;;  %v717_v34 = vmax.f32 %v596_v27, 0.0 }
 0x1eb   :  { %v718_v33 = vmax.f32 %v598_v29, 0.0 }
 0x1ec   :  { %v719_v35 = vmax.f32 %v600_v31, 0.0 }
 0x1ed   :  { %v762_v36 = vpack.c.bf16 %v718_v33, %v716_v32 }
 0x1ee   :  { %v2747_v38 = vpack.c.bf16 %v719_v35, %v717_v34  ;;  %v603_v39 = vpop.f32.mrb[28].mxu1 }
 0x1ef   :  { %v604_v40 = vadd.f32 %v603_v39, %v2682_v56  ;;  %v605_v41 = vpop.f32.mrb[29].mxu1  ;;  %2122 = vmatprep.mubr.bf16.mxu0 %v762_v36 }
 0x1f0   :  { %v606_v42 = vadd.f32 %v605_v41, %v2684_v57  ;;  %v607_v43 = vpop.f32.mrb[30].mxu1 }
 0x1f1   :  { %v608_v44 = vadd.f32 %v607_v43, %v2682_v56  ;;  %v609_v54 = vpop.f32.mrb[31].mxu1  ;;  %v720_v46 = vmax.f32 %v604_v40, 0.0 }
 0x1f2   :  { %v610_v45 = vadd.f32 %v609_v54, %v2684_v57  ;;  %v721_v48 = vmax.f32 %v606_v42, 0.0 }
 0x1f3   :  { %v722_v47 = vmax.f32 %v608_v44, 0.0 }
 0x1f4   :  { %v723_v49 = vmax.f32 %v610_v45, 0.0 }
 0x1f5   :  { %v763_v50 = vpack.c.bf16 %v722_v47, %v720_v46 }
 0x1f6   :  { %v2753_v51 = vpack.c.bf16 %v723_v49, %v721_v48  ;;  %v613_v55 = vpop.f32.mrb[32].mxu1 }
 0x1f7   :  { %v614_v53 = vadd.f32 %v613_v55, %v2682_v56  ;;  %v615_v58 = vpop.f32.mrb[33].mxu1  ;;  %2123 = vmatmul.mubr.bf16.gmra.mrb[44].mxu0 %v763_v50 }
 0x1f8   :  { %v616_v59 = vadd.f32 %v615_v58, %v2684_v57  ;;  %v617_v60 = vpop.f32.mrb[34].mxu1 }
 0x1f9   :  { %v618_v61 = vadd.f32 %v617_v60, %v2682_v56  ;;  %v619_v62 = vpop.f32.mrb[35].mxu1  ;;  %v724_v0 = vmax.f32 %v614_v53, 0.0 }
 0x1fa   :  { %v620_v63 = vadd.f32 %v619_v62, %v2684_v57  ;;  %v725_v2 = vmax.f32 %v616_v59, 0.0 }
 0x1fb   :  { %v726_v1 = vmax.f32 %v618_v61, 0.0 }
 0x1fc   :  { %v727_v3 = vmax.f32 %v620_v63, 0.0 }
 0x1fd   :  { %v764_v4 = vpack.c.bf16 %v726_v1, %v724_v0 }
 0x1fe   :  { %v2759_v5 = vpack.c.bf16 %v727_v3, %v725_v2  ;;  %v623_v7 = vpop.f32.mrb[36].mxu1 }
 0x1ff   :  { %v624_v9 = vadd.f32 %v623_v7, %v2682_v56  ;;  %v625_v10 = vpop.f32.mrb[37].mxu1  ;;  %2126 = vmatprep.mubr.bf16.mxu0 %v764_v4 }
 0x200   :  { %v626_v11 = vadd.f32 %v625_v10, %v2684_v57  ;;  %v627_v12 = vpop.f32.mrb[38].mxu1 }
 0x201   :  { %v628_v13 = vadd.f32 %v627_v12, %v2682_v56  ;;  %v629_v14 = vpop.f32.mrb[39].mxu1  ;;  %v728_v16 = vmax.f32 %v624_v9, 0.0 }
 0x202   :  { %v630_v15 = vadd.f32 %v629_v14, %v2684_v57  ;;  %v729_v18 = vmax.f32 %v626_v11, 0.0 }
 0x203   :  { %v730_v17 = vmax.f32 %v628_v13, 0.0 }
 0x204   :  { %v731_v19 = vmax.f32 %v630_v15, 0.0 }
 0x205   :  { %v765_v20 = vpack.c.bf16 %v730_v17, %v728_v16 }
 0x206   :  { %v2765_v22 = vpack.c.bf16 %v731_v19, %v729_v18  ;;  %v633_v24 = vpop.f32.mrb[40].mxu1 }
 0x207   :  { %v634_v25 = vadd.f32 %v633_v24, %v2682_v56  ;;  %v635_v26 = vpop.f32.mrb[41].mxu1  ;;  %2127 = vmatmul.mubr.bf16.gmra.mrb[48].mxu0 %v765_v20 }
 0x208   :  { %v636_v27 = vadd.f32 %v635_v26, %v2684_v57  ;;  %v637_v28 = vpop.f32.mrb[42].mxu1 }
 0x209   :  { %v638_v29 = vadd.f32 %v637_v28, %v2682_v56  ;;  %v639_v30 = vpop.f32.mrb[43].mxu1  ;;  %v732_v32 = vmax.f32 %v634_v25, 0.0 }
 0x20a   :  { %v640_v31 = vadd.f32 %v639_v30, %v2684_v57  ;;  %v733_v34 = vmax.f32 %v636_v27, 0.0 }
 0x20b   :  { %v734_v33 = vmax.f32 %v638_v29, 0.0 }
 0x20c   :  { %v735_v35 = vmax.f32 %v640_v31, 0.0 }
 0x20d   :  { %v766_v36 = vpack.c.bf16 %v734_v33, %v732_v32 }
 0x20e   :  { %v2771_v39 = vpack.c.bf16 %v735_v35, %v733_v34  ;;  %v643_v40 = vpop.f32.mrb[44].mxu1 }
 0x20f   :  { %v644_v41 = vadd.f32 %v643_v40, %v2682_v56  ;;  %v645_v42 = vpop.f32.mrb[45].mxu1  ;;  %2130 = vmatprep.mubr.bf16.mxu0 %v766_v36 }
 0x210   :  { %v646_v43 = vadd.f32 %v645_v42, %v2684_v57  ;;  %v647_v44 = vpop.f32.mrb[46].mxu1 }
 0x211   :  { %v648_v54 = vadd.f32 %v647_v44, %v2682_v56  ;;  %v649_v45 = vpop.f32.mrb[47].mxu1  ;;  %v736_v47 = vmax.f32 %v644_v41, 0.0 }
 0x212   :  { %v650_v46 = vadd.f32 %v649_v45, %v2684_v57  ;;  %v737_v49 = vmax.f32 %v646_v43, 0.0 }
 0x213   :  { %v738_v48 = vmax.f32 %v648_v54, 0.0 }
 0x214   :  { %v739_v50 = vmax.f32 %v650_v46, 0.0 }
 0x215   :  { %v767_v55 = vpack.c.bf16 %v738_v48, %v736_v47 }
 0x216   :  { %v2777_v53 = vpack.c.bf16 %v739_v50, %v737_v49  ;;  %v653_v58 = vpop.f32.mrb[48].mxu1 }
 0x217   :  { %v654_v59 = vadd.f32 %v653_v58, %v2682_v56  ;;  %v655_v60 = vpop.f32.mrb[49].mxu1  ;;  %2131 = vmatmul.mubr.bf16.gmra.mrb[52].mxu0 %v767_v55 }
 0x218   :  { %v656_v61 = vadd.f32 %v655_v60, %v2684_v57  ;;  %v657_v62 = vpop.f32.mrb[50].mxu1 }
 0x219   :  { %v658_v63 = vadd.f32 %v657_v62, %v2682_v56  ;;  %v659_v0 = vpop.f32.mrb[51].mxu1  ;;  %v740_v2 = vmax.f32 %v654_v59, 0.0 }
 0x21a   :  { %v660_v1 = vadd.f32 %v659_v0, %v2684_v57  ;;  %v741_v4 = vmax.f32 %v656_v61, 0.0 }
 0x21b   :  { %v742_v3 = vmax.f32 %v658_v63, 0.0 }
 0x21c   :  { %v743_v7 = vmax.f32 %v660_v1, 0.0 }
 0x21d   :  { %v768_v9 = vpack.c.bf16 %v742_v3, %v740_v2 }
 0x21e   :  { %v784_v10 = vpack.c.bf16 %v743_v7, %v741_v4  ;;  %v663_v11 = vpop.f32.mrb[52].mxu1 }
 0x21f   :  { %v664_v12 = vadd.f32 %v663_v11, %v2682_v56  ;;  %v665_v13 = vpop.f32.mrb[53].mxu1  ;;  %2134 = vmatprep.mubr.bf16.mxu0 %v768_v9 }
 0x220   :  { %v666_v14 = vadd.f32 %v665_v13, %v2684_v57  ;;  %v667_v15 = vpop.f32.mrb[54].mxu1 }
 0x221   :  { %v668_v16 = vadd.f32 %v667_v15, %v2682_v56  ;;  %v669_v17 = vpop.f32.mrb[55].mxu1  ;;  %v744_v19 = vmax.f32 %v664_v12, 0.0 }
 0x222   :  { %v670_v18 = vadd.f32 %v669_v17, %v2684_v57  ;;  %v745_v24 = vmax.f32 %v666_v14, 0.0 }
 0x223   :  { %v746_v20 = vmax.f32 %v668_v16, 0.0 }
 0x224   :  { %v747_v25 = vmax.f32 %v670_v18, 0.0 }
 0x225   :  { %v769_v26 = vpack.c.bf16 %v746_v20, %v744_v19 }
 0x226   :  { %v785_v27 = vpack.c.bf16 %v747_v25, %v745_v24  ;;  %v673_v28 = vpop.f32.mrb[56].mxu1 }
 0x227   :  { %v674_v29 = vadd.f32 %v673_v28, %v2682_v56  ;;  %v675_v30 = vpop.f32.mrb[57].mxu1  ;;  %2135 = vmatmul.mubr.bf16.gmra.mrb[56].mxu0 %v769_v26  ;;  %v93_v26 = vld [vmem:[%s3587_s1] sm:$0xff]  ;;  %v95_v28 = vld [vmem:[%s3587_s1 + $0x10] sm:$0xff] }
 0x228   :  { %v676_v31 = vadd.f32 %v675_v30, %v2684_v57  ;;  %v677_v32 = vpop.f32.mrb[58].mxu1  ;;  %v96_v30 = vld [vmem:[%s3587_s1 + $0x18] sm:$0xff] }
 0x229   :  { %v678_v33 = vadd.f32 %v677_v32, %v2682_v56  ;;  %v679_v34 = vpop.f32.mrb[59].mxu1  ;;  %v748_v36 = vmax.f32 %v674_v29, 0.0  ;;  %v98_v32 = vld [vmem:[%s3587_s1 + $0x28] sm:$0xff] }
 0x22a   :  { %v680_v35 = vadd.f32 %v679_v34, %v2684_v57  ;;  %v749_v41 = vmax.f32 %v676_v31, 0.0  ;;  %v97_v31 = vld [vmem:[%s3587_s1 + $0x20] sm:$0xff] }
 0x22b   :  { %v750_v40 = vmax.f32 %v678_v33, 0.0  ;;  %v126_v33 = vpack.c.bf16 %v96_v30, %v95_v28  ;;  %v127_v34 = vpack.c.bf16 %v98_v32, %v97_v31  ;;  %v3030_v31 = vld [vmem:[%s3588_s9] ss:$0 sm:$0xff] }
 0x22c   :  { %v751_v42 = vmax.f32 %v680_v35, 0.0 }
 0x22d   :  { %v770_v43 = vpack.c.bf16 %v750_v40, %v748_v36  ;;  %v99_v36 = vld [vmem:[%s3587_s1 + $0x30] sm:$0xff]  ;;  %v100_v40 = vld [vmem:[%s3587_s1 + $0x38] sm:$0xff] }
 0x22e   :  { %v786_v44 = vpack.c.bf16 %v751_v42, %v749_v41  ;;  %v683_v54 = vpop.f32.mrb[60].mxu1 }
 0x22f   :  { %v684_v45 = vadd.f32 %v683_v54, %v2682_v56  ;;  %v685_v46 = vpop.f32.mrb[61].mxu1  ;;  %2138 = vmatprep.mubr.bf16.mxu0 %v770_v43  ;;  %v101_v43 = vld [vmem:[%s3587_s1 + $0x40] sm:$0xff] }
 0x230   :  { %v686_v47 = vadd.f32 %v685_v46, %v2684_v57  ;;  %v687_v48 = vpop.f32.mrb[62].mxu1 }
 0x231   :  { %v688_v49 = vadd.f32 %v687_v48, %v2682_v56  ;;  %v689_v50 = vpop.f32.mrb[63].mxu1  ;;  %v752_v58 = vmax.f32 %v684_v45, 0.0  ;;  %v2248_v56 = vld [vmem:[%s3584_s10] sm:$0xff]   ;;  %v128_v48 = vpack.c.bf16 %v100_v40, %v99_v36 }
 0x232   :  { %v690_v55 = vadd.f32 %v689_v50, %v2684_v57  ;;  %v753_v60 = vmax.f32 %v686_v47, 0.0  ;;  %2190 = vmatprep.subr.bf16.mxu1 %v2248_v56  ;;  %v2813_v57 = vld [vmem:[%s3585_s7] ss:$0 sm:$0xff] }
 0x233   :  { %v754_v59 = vmax.f32 %v688_v49, 0.0  ;;  %2191 = vmatpush3.bf16.msra.mxu1 %v2248_v56  ;;  %v107_v56 = vld [vmem:[%s3587_s1 + $0x70] sm:$0xff] }
 0x234   :  { %v755_v61 = vmax.f32 %v690_v55, 0.0  ;;  %v103_v55 = vld [vmem:[%s3587_s1 + $0x50] sm:$0xff] }
 0x235   :  { %v771_v62 = vpack.c.bf16 %v754_v59, %v752_v58  ;;  %v104_v58 = vld [vmem:[%s3587_s1 + $0x58] sm:$0xff]  ;;  %v105_v59 = vld [vmem:[%s3587_s1 + $0x60] sm:$0xff] }
 0x236   :  { %v787_v63 = vpack.c.bf16 %v755_v61, %v753_v60  ;;  %v106_v60 = vld [vmem:[%s3587_s1 + $0x68] sm:$0xff]  ;;  %v130_v61 = vpack.c.bf16 %v104_v58, %v103_v55  ;;  %v117_v58 = vld [vmem:[%s3587_s1 + $0xc0] sm:$0xff] }
 0x237   :  { %2139 = vmatmul.mubr.bf16.gmra.mrb[60].mxu0 %v771_v62  ;;  %v131_v62 = vpack.c.bf16 %v106_v60, %v105_v59  ;;  %v118_v59 = vld [vmem:[%s3587_s1 + $0xc8] sm:$0xff] }
 0x238   :  { %2158 = vmatprep.mubr.bf16.mxu0 %v2690_v6 }
 0x23f   :  { %2159 = vmatmul.mubr.bf16.vlgmr.msra.gmra.mrb[64].mxu0 %v2699_v21 }
 0x240   :  { %2162 = vmatprep.mubr.bf16.mxu0 %v2711_v37 }
 0x247   :  { %2163 = vmatmul.mubr.bf16.gmra.mrb[68].mxu0 %v2723_v52 }
 0x248   :  { %2166 = vmatprep.mubr.bf16.mxu0 %v2735_v8 }
 0x24f   :  { %2167 = vmatmul.mubr.bf16.gmra.mrb[72].mxu0 %v2741_v23 }
 0x250   :  { %2170 = vmatprep.mubr.bf16.mxu0 %v2747_v38 }
 0x257   :  { %2171 = vmatmul.mubr.bf16.gmra.mrb[76].mxu0 %v2753_v51 }
 0x258   :  { %2174 = vmatprep.mubr.bf16.mxu0 %v2759_v5 }
 0x25f   :  { %2175 = vmatmul.mubr.bf16.gmra.mrb[80].mxu0 %v2765_v22 }
 0x260   :  { %2178 = vmatprep.mubr.bf16.mxu0 %v2771_v39 }
 0x267   :  { %2179 = vmatmul.mubr.bf16.gmra.mrb[84].mxu0 %v2777_v53 }
 0x268   :  { %2182 = vmatprep.mubr.bf16.mxu0 %v784_v10 }
 0x26f   :  { %2183 = vmatmul.mubr.bf16.gmra.mrb[88].mxu0 %v785_v27  ;;  %v94_v27 = vld [vmem:[%s3587_s1 + $0x8] sm:$0xff] }
 0x270   :  { %2186 = vmatprep.mubr.bf16.mxu0 %v786_v44  ;;  %v125_v29 = vpack.c.bf16 %v94_v27, %v93_v26  ;;  %v102_v44 = vld [vmem:[%s3587_s1 + $0x48] sm:$0xff] }
 0x271   :  { %v129_v50 = vpack.c.bf16 %v102_v44, %v101_v43 }
 0x272   :  { %2192 = vmatprep.mubr.msk.bf16.mxu1 %vm156_vm0, %v125_v29 }
 0x273   :  { %2193 = vmatmul.mubr.msk.bf16.vlgmr.msra.gmra.mrb[64].mxu1 %vm156_vm0, %v126_v33 }
 0x274   :  { %2196 = vmatprep.mubr.msk.bf16.mxu1 %vm156_vm0, %v127_v34 }
 0x277   :  { %2187 = vmatmul.mubr.bf16.gmra.mrb[92].mxu0 %v787_v63 }
 0x27b   :  { %2197 = vmatmul.mubr.msk.bf16.gmra.mrb[68].mxu1 %vm156_vm0, %v128_v48 }
 0x27c   :  { %2200 = vmatprep.mubr.msk.bf16.mxu1 %vm156_vm0, %v129_v50 }
 0x283   :  { %2201 = vmatmul.mubr.msk.bf16.gmra.mrb[72].mxu1 %vm156_vm0, %v130_v61  ;;  %v137_v61 = vpack.c.bf16 %v118_v59, %v117_v58 }
 0x284   :  { %2204 = vmatprep.mubr.msk.bf16.mxu1 %vm156_vm0, %v131_v62  ;;  %v119_v62 = vld [vmem:[%s3587_s1 + $0xd0] sm:$0xff] }
 0x29a   :  { %v2112_v6 = vpop.f32.mrb[32].mxu0 }
 0x29b   :  { %v902_v21 = vadd.f32 %v2112_v6, %v2813_v57  ;;  %v893_v37 = vpop.f32.mrb[33].mxu0  ;;  %v108_v6 = vld [vmem:[%s3587_s1 + $0x78] sm:$0xff] }
 0x29c   :  { %v894_v52 = vadd.f32 %v2813_v57, %v893_v37  ;;  %v2113_v8 = vpop.f32.mrb[34].mxu0 }
 0x29d   :  { %1022 = vst [vmem:[%s3586_s12 + $0x10] sm:$0xff] %v902_v21  ;;  %v905_v23 = vadd.f32 %v2113_v8, %v2813_v57  ;;  %v896_v38 = vpop.f32.mrb[35].mxu0  ;;  %v110_v8 = vld [vmem:[%s3587_s1 + $0x88] sm:$0xff] }
 0x29e   :  { %1020 = vst [vmem:[%s3586_s12] sm:$0xff] %v894_v52  ;;  %v897_v51 = vadd.f32 %v2813_v57, %v896_v38  ;;  %v109_v52 = vld [vmem:[%s3587_s1 + $0x80] sm:$0xff] }
 0x29f   :  { %1023 = vst [vmem:[%s3586_s12 + $0x18] sm:$0xff] %v905_v23 }
 0x2a0   :  { %1021 = vst [vmem:[%s3586_s12 + $0x8] sm:$0xff] %v897_v51 }
 0x2aa   :  { %v2116_v5 = vpop.f32.mrb[36].mxu0 }
 0x2ab   :  { %v918_v22 = vadd.f32 %v2116_v5, %v2813_v57  ;;  %v909_v39 = vpop.f32.mrb[37].mxu0 }
 0x2ac   :  { %v910_v53 = vadd.f32 %v2813_v57, %v909_v39  ;;  %v2117_v0 = vpop.f32.mrb[38].mxu0 }
 0x2ad   :  { %1026 = vst [vmem:[%s3586_s12 + $0x30] sm:$0xff] %v918_v22  ;;  %v921_v1 = vadd.f32 %v2117_v0, %v2813_v57  ;;  %v912_v2 = vpop.f32.mrb[39].mxu0  ;;  %v132_v22 = vpack.c.bf16 %v108_v6, %v107_v56  ;;  %v111_v0 = vld [vmem:[%s3587_s1 + $0x90] sm:$0xff] }
 0x2ae   :  { %1024 = vst [vmem:[%s3586_s12 + $0x20] sm:$0xff] %v910_v53  ;;  %v913_v3 = vadd.f32 %v2813_v57, %v912_v2  ;;  %v133_v53 = vpack.c.bf16 %v110_v8, %v109_v52  ;;  %v113_v2 = vld [vmem:[%s3587_s1 + $0xa0] sm:$0xff] }
 0x2af   :  { %1027 = vst [vmem:[%s3586_s12 + $0x38] sm:$0xff] %v921_v1  ;;  %2205 = vmatmul.mubr.msk.bf16.gmra.mrb[76].mxu1 %vm156_vm0, %v132_v22  ;;  %v112_v1 = vld [vmem:[%s3587_s1 + $0x98] sm:$0xff] }
 0x2b0   :  { %1025 = vst [vmem:[%s3586_s12 + $0x28] sm:$0xff] %v913_v3  ;;  %2208 = vmatprep.mubr.msk.bf16.mxu1 %vm156_vm0, %v133_v53  ;;  %v114_v3 = vld [vmem:[%s3587_s1 + $0xa8] sm:$0xff]  ;;  %v123_v53 = vld [vmem:[%s3587_s1 + $0xf0] sm:$0xff] }
 0x2ba   :  { %v2120_v4 = vpop.f32.mrb[40].mxu0 }
 0x2bb   :  { %v934_v7 = vadd.f32 %v2120_v4, %v2813_v57  ;;  %v925_v9 = vpop.f32.mrb[41].mxu0  ;;  %v134_v4 = vpack.c.bf16 %v112_v1, %v111_v0  ;;  %v124_v0 = vld [vmem:[%s3587_s1 + $0xf8] sm:$0xff] }
 0x2bc   :  { %v926_v10 = vadd.f32 %v2813_v57, %v925_v9  ;;  %v2121_v11 = vpop.f32.mrb[42].mxu0 }
 0x2bd   :  { %1030 = vst [vmem:[%s3586_s12 + $0x50] sm:$0xff] %v934_v7  ;;  %v937_v12 = vadd.f32 %v2121_v11, %v2813_v57  ;;  %v928_v13 = vpop.f32.mrb[43].mxu0  ;;  %v135_v7 = vpack.c.bf16 %v114_v3, %v113_v2  ;;  %2209 = vmatmul.mubr.msk.bf16.gmra.mrb[80].mxu1 %vm156_vm0, %v134_v4  ;;  %v116_v11 = vld [vmem:[%s3587_s1 + $0xb8] sm:$0xff]  ;;  %v140_v3 = vpack.c.bf16 %v124_v0, %v123_v53 }
 0x2be   :  { %1028 = vst [vmem:[%s3586_s12 + $0x40] sm:$0xff] %v926_v10  ;;  %v929_v14 = vadd.f32 %v2813_v57, %v928_v13  ;;  %v115_v10 = vld [vmem:[%s3587_s1 + $0xb0] sm:$0xff] }
 0x2bf   :  { %1031 = vst [vmem:[%s3586_s12 + $0x58] sm:$0xff] %v937_v12  ;;  %2212 = vmatprep.mubr.msk.bf16.mxu1 %vm156_vm0, %v135_v7 }
 0x2c0   :  { %1029 = vst [vmem:[%s3586_s12 + $0x48] sm:$0xff] %v929_v14 }
 0x2ca   :  { %v2124_v15 = vpop.f32.mrb[44].mxu0 }
 0x2cb   :  { %v950_v16 = vadd.f32 %v2124_v15, %v2813_v57  ;;  %v941_v17 = vpop.f32.mrb[45].mxu0 }
 0x2cc   :  { %v942_v18 = vadd.f32 %v2813_v57, %v941_v17  ;;  %v2125_v19 = vpop.f32.mrb[46].mxu0 }
 0x2cd   :  { %1034 = vst [vmem:[%s3586_s12 + $0x70] sm:$0xff] %v950_v16  ;;  %v953_v20 = vadd.f32 %v2125_v19, %v2813_v57  ;;  %v944_v24 = vpop.f32.mrb[47].mxu0 }
 0x2ce   :  { %1032 = vst [vmem:[%s3586_s12 + $0x60] sm:$0xff] %v942_v18  ;;  %v945_v25 = vadd.f32 %v2813_v57, %v944_v24  ;;  %v136_v18 = vpack.c.bf16 %v116_v11, %v115_v10 }
 0x2cf   :  { %1035 = vst [vmem:[%s3586_s12 + $0x78] sm:$0xff] %v953_v20 }
 0x2d0   :  { %1033 = vst [vmem:[%s3586_s12 + $0x68] sm:$0xff] %v945_v25  ;;  %2213 = vmatmul.mubr.msk.bf16.gmra.mrb[84].mxu1 %vm156_vm0, %v136_v18 }
 0x2d1   :  { %2216 = vmatprep.mubr.msk.bf16.mxu1 %vm156_vm0, %v137_v61 }
 0x2da   :  { %v2128_v35 = vpop.f32.mrb[48].mxu0 }
 0x2db   :  { %v966_v41 = vadd.f32 %v2128_v35, %v2813_v57  ;;  %v957_v42 = vpop.f32.mrb[49].mxu0 }
 0x2dc   :  { %v958_v54 = vadd.f32 %v2813_v57, %v957_v42  ;;  %v2129_v45 = vpop.f32.mrb[50].mxu0 }
 0x2dd   :  { %1038 = vst [vmem:[%s3586_s12 + $0x90] sm:$0xff] %v966_v41  ;;  %v969_v46 = vadd.f32 %v2129_v45, %v2813_v57  ;;  %v960_v47 = vpop.f32.mrb[51].mxu0 }
 0x2de   :  { %1036 = vst [vmem:[%s3586_s12 + $0x80] sm:$0xff] %v958_v54  ;;  %v961_v49 = vadd.f32 %v2813_v57, %v960_v47 }
 0x2df   :  { %1039 = vst [vmem:[%s3586_s12 + $0x98] sm:$0xff] %v969_v46 }
 0x2e0   :  { %1037 = vst [vmem:[%s3586_s12 + $0x88] sm:$0xff] %v961_v49 }
 0x2ea   :  { %v2132_v63 = vpop.f32.mrb[52].mxu0 }
 0x2eb   :  { %v982_v21 = vadd.f32 %v2132_v63, %v2813_v57  ;;  %v973_v37 = vpop.f32.mrb[53].mxu0  ;;  %v120_v63 = vld [vmem:[%s3587_s1 + $0xd8] sm:$0xff] }
 0x2ec   :  { %v974_v23 = vadd.f32 %v2813_v57, %v973_v37  ;;  %v2133_v38 = vpop.f32.mrb[54].mxu0 }
 0x2ed   :  { %1042 = vst [vmem:[%s3586_s12 + $0xb0] sm:$0xff] %v982_v21  ;;  %v985_v51 = vadd.f32 %v2133_v38, %v2813_v57  ;;  %v976_v5 = vpop.f32.mrb[55].mxu0  ;;  %v138_v21 = vpack.c.bf16 %v120_v63, %v119_v62 }
 0x2ee   :  { %1040 = vst [vmem:[%s3586_s12 + $0xa0] sm:$0xff] %v974_v23  ;;  %v977_v39 = vadd.f32 %v2813_v57, %v976_v5  ;;  %v122_v5 = vld [vmem:[%s3587_s1 + $0xe8] sm:$0xff] }
 0x2ef   :  { %1043 = vst [vmem:[%s3586_s12 + $0xb8] sm:$0xff] %v985_v51  ;;  %2217 = vmatmul.mubr.msk.bf16.gmra.mrb[88].mxu1 %vm156_vm0, %v138_v21  ;;  %v121_v51 = vld [vmem:[%s3587_s1 + $0xe0] sm:$0xff] }
 0x2f0   :  { %1041 = vst [vmem:[%s3586_s12 + $0xa8] sm:$0xff] %v977_v39  ;;  %v139_v39 = vpack.c.bf16 %v122_v5, %v121_v51 }
 0x2f2   :  { %2220 = vmatprep.mubr.msk.bf16.mxu1 %vm156_vm0, %v139_v39 }
 0x2f7   :  { %2221 = vmatmul.mubr.msk.bf16.gmra.mrb[92].mxu1 %vm156_vm0, %v140_v3 }
 0x2fa   :  { %v2136_v9 = vpop.f32.mrb[56].mxu0 }
 0x2fb   :  { %v998_v12 = vadd.f32 %v2136_v9, %v2813_v57  ;;  %v989_v13 = vpop.f32.mrb[57].mxu0 }
 0x2fc   :  { %v990_v14 = vadd.f32 %v2813_v57, %v989_v13  ;;  %v2137_v15 = vpop.f32.mrb[58].mxu0 }
 0x2fd   :  { %1046 = vst [vmem:[%s3586_s12 + $0xd0] sm:$0xff] %v998_v12  ;;  %v1001_v16 = vadd.f32 %v2137_v15, %v2813_v57  ;;  %v992_v17 = vpop.f32.mrb[59].mxu0 }
 0x2fe   :  { %1044 = vst [vmem:[%s3586_s12 + $0xc0] sm:$0xff] %v990_v14  ;;  %v993_v19 = vadd.f32 %v2813_v57, %v992_v17 }
 0x2ff   :  { %1047 = vst [vmem:[%s3586_s12 + $0xd8] sm:$0xff] %v1001_v16 }
 0x300   :  { %1045 = vst [vmem:[%s3586_s12 + $0xc8] sm:$0xff] %v993_v19 }
 0x30a   :  { %v2140_v20 = vpop.f32.mrb[60].mxu0 }
 0x30b   :  { %v1014_v24 = vadd.f32 %v2140_v20, %v2813_v57  ;;  %v1005_v25 = vpop.f32.mrb[61].mxu0 }
 0x30c   :  { %v1006_v26 = vadd.f32 %v2813_v57, %v1005_v25  ;;  %v2141_v27 = vpop.f32.mrb[62].mxu0 }
 0x30d   :  { %1050 = vst [vmem:[%s3586_s12 + $0xf0] sm:$0xff] %v1014_v24  ;;  %v1017_v28 = vadd.f32 %v2141_v27, %v2813_v57  ;;  %v1008_v29 = vpop.f32.mrb[63].mxu0 }
 0x30e   :  { %1048 = vst [vmem:[%s3586_s12 + $0xe0] sm:$0xff] %v1006_v26  ;;  %v1009_v30 = vadd.f32 %v2813_v57, %v1008_v29 }
 0x30f   :  { %1051 = vst [vmem:[%s3586_s12 + $0xf8] sm:$0xff] %v1017_v28 }
 0x310   :  { %1049 = vst [vmem:[%s3586_s12 + $0xe8] sm:$0xff] %v1009_v30 }
 0x312   :  { %v2160_v32 = vpop.f32.mrb[64].mxu0 }
 0x313   :  { %v3033_v33 = vadd.f32 %v2160_v32, %v3030_v31  ;;  %v1157_v34 = vpop.f32.mrb[65].mxu0 }
 0x314   :  { %v3036_v57 = vadd.f32 %v3030_v31, %v1157_v34  ;;  %v2161_v35 = vpop.f32.mrb[66].mxu0 }
 0x315   :  { %1288 = vmax.xlane.f32.xlu1 %v3033_v33  ;;  %v1160_v36 = vpop.f32.mrb[67].mxu0  ;;  %v3041_v40 = vadd.f32 %v2161_v35, %v3030_v31 }
 0x316   :  { %1284 = vmax.xlane.f32.xlu0 %v3036_v57  ;;  %v3044_v41 = vadd.f32 %v3030_v31, %v1160_v36 }
 0x319   :  { %1290 = vmax.xlane.f32.xlu1 %v3041_v40 }
 0x31a   :  { %v2164_v42 = vpop.f32.mrb[68].mxu0  ;;  %1286 = vmax.xlane.f32.xlu0 %v3044_v41 }
 0x31b   :  { %v3049_v43 = vadd.f32 %v2164_v42, %v3030_v31  ;;  %v1173_v44 = vpop.f32.mrb[69].mxu0 }
 0x31c   :  { %v2165_v54 = vpop.f32.mrb[70].mxu0  ;;  %v3057_v47 = vadd.f32 %v3030_v31, %v1173_v44 }
 0x31d   :  { %v3052_v45 = vadd.f32 %v2165_v54, %v3030_v31  ;;  %v1176_v46 = vpop.f32.mrb[71].mxu0 }
 0x31e   :  { %1296 = vmax.xlane.f32.xlu0 %v3049_v43  ;;  %v3060_v48 = vadd.f32 %v3030_v31, %v1176_v46 }
 0x31f   :  { %1298 = vmax.xlane.f32.xlu1 %v3052_v45 }
 0x322   :  { %v2168_v49 = vpop.f32.mrb[72].mxu0  ;;  %1292 = vmax.xlane.f32.xlu0 %v3057_v47 }
 0x323   :  { %v3064_v50 = vadd.f32 %v2168_v49, %v3030_v31  ;;  %v1189_v55 = vpop.f32.mrb[73].mxu0  ;;  %1294 = vmax.xlane.f32.xlu1 %v3060_v48 }
 0x324   :  { %v2169_v60 = vpop.f32.mrb[74].mxu0  ;;  %v3087_v37 = vadd.f32 %v3030_v31, %v1189_v55 }
 0x325   :  { %v3080_v56 = vadd.f32 %v2169_v60, %v3030_v31  ;;  %v1192_v6 = vpop.f32.mrb[75].mxu0 }
 0x326   :  { %1304 = vmax.xlane.f32.xlu0 %v3064_v50  ;;  %v3090_v52 = vadd.f32 %v3030_v31, %v1192_v6 }
 0x327   :  { %1306 = vmax.xlane.f32.xlu1 %v3080_v56 }
 0x32a   :  { %v2172_v8 = vpop.f32.mrb[76].mxu0  ;;  %1300 = vmax.xlane.f32.xlu0 %v3087_v37 }
 0x32b   :  { %v3094_v23 = vadd.f32 %v2172_v8, %v3030_v31  ;;  %v1205_v38 = vpop.f32.mrb[77].mxu0  ;;  %1302 = vmax.xlane.f32.xlu1 %v3090_v52 }
 0x32c   :  { %v2173_v22 = vpop.f32.mrb[78].mxu0  ;;  %v3117_v4 = vadd.f32 %v3030_v31, %v1205_v38 }
 0x32d   :  { %v3110_v1 = vadd.f32 %v2173_v22, %v3030_v31  ;;  %v1208_v2 = vpop.f32.mrb[79].mxu0 }
 0x32e   :  { %1312 = vmax.xlane.f32.xlu0 %v3094_v23  ;;  %v3120_v7 = vadd.f32 %v3030_v31, %v1208_v2 }
 0x32f   :  { %1314 = vmax.xlane.f32.xlu1 %v3110_v1 }
 0x332   :  { %v2176_v9 = vpop.f32.mrb[80].mxu0  ;;  %1308 = vmax.xlane.f32.xlu0 %v3117_v4 }
 0x333   :  { %v3124_v10 = vadd.f32 %v2176_v9, %v3030_v31  ;;  %v1221_v11 = vpop.f32.mrb[81].mxu0  ;;  %1310 = vmax.xlane.f32.xlu1 %v3120_v7 }
 0x334   :  { %v2177_v12 = vpop.f32.mrb[82].mxu0  ;;  %v3133_v15 = vadd.f32 %v3030_v31, %v1221_v11 }
 0x335   :  { %v3128_v13 = vadd.f32 %v2177_v12, %v3030_v31  ;;  %v1224_v14 = vpop.f32.mrb[83].mxu0 }
 0x336   :  { %1320 = vmax.xlane.f32.xlu0 %v3124_v10  ;;  %v3136_v16 = vadd.f32 %v3030_v31, %v1224_v14 }
 0x337   :  { %1322 = vmax.xlane.f32.xlu1 %v3128_v13 }
 0x33a   :  { %v2180_v17 = vpop.f32.mrb[84].mxu0  ;;  %1316 = vmax.xlane.f32.xlu0 %v3133_v15 }
 0x33b   :  { %v3140_v18 = vadd.f32 %v2180_v17, %v3030_v31  ;;  %v1237_v19 = vpop.f32.mrb[85].mxu0  ;;  %1318 = vmax.xlane.f32.xlu1 %v3136_v16 }
 0x33c   :  { %v2181_v20 = vpop.f32.mrb[86].mxu0  ;;  %v3149_v26 = vadd.f32 %v3030_v31, %v1237_v19 }
 0x33d   :  { %v3144_v24 = vadd.f32 %v2181_v20, %v3030_v31  ;;  %v1240_v25 = vpop.f32.mrb[87].mxu0 }
 0x33e   :  { %1328 = vmax.xlane.f32.xlu0 %v3140_v18  ;;  %v3152_v27 = vadd.f32 %v3030_v31, %v1240_v25 }
 0x33f   :  { %1330 = vmax.xlane.f32.xlu1 %v3144_v24 }
 0x342   :  { %v2184_v28 = vpop.f32.mrb[88].mxu0  ;;  %1324 = vmax.xlane.f32.xlu0 %v3149_v26 }
 0x343   :  { %v3156_v29 = vadd.f32 %v2184_v28, %v3030_v31  ;;  %v1253_v30 = vpop.f32.mrb[89].mxu0  ;;  %1326 = vmax.xlane.f32.xlu1 %v3152_v27 }
 0x344   :  { %v2185_v32 = vpop.f32.mrb[90].mxu0  ;;  %v3165_v36 = vadd.f32 %v3030_v31, %v1253_v30 }
 0x345   :  { %v3160_v34 = vadd.f32 %v2185_v32, %v3030_v31  ;;  %v1256_v35 = vpop.f32.mrb[91].mxu0 }
 0x346   :  { %1336 = vmax.xlane.f32.xlu0 %v3156_v29  ;;  %v3168_v42 = vadd.f32 %v3030_v31, %v1256_v35 }
 0x347   :  { %1338 = vmax.xlane.f32.xlu1 %v3160_v34 }
 0x34a   :  { %v2188_v44 = vpop.f32.mrb[92].mxu0  ;;  %1332 = vmax.xlane.f32.xlu0 %v3165_v36 }
 0x34b   :  { %v1269_v54 = vpop.f32.mrb[93].mxu0  ;;  %1334 = vmax.xlane.f32.xlu1 %v3168_v42  ;;  %v3180_v59 = vadd.f32 %v2188_v44, %v3030_v31 }
 0x34c   :  { %v3173_v46 = vadd.f32 %v3030_v31, %v1269_v54  ;;  %v2189_v49 = vpop.f32.mrb[94].mxu0 }
 0x34d   :  { %v1272_v55 = vpop.f32.mrb[95].mxu0  ;;  %v3184_v60 = vadd.f32 %v2189_v49, %v3030_v31 }
 0x34e   :  { %v3176_v58 = vadd.f32 %v3030_v31, %v1272_v55  ;;  %1340 = vmax.xlane.f32.xlu0 %v3173_v46 }
 0x350   :  { %1342 = vmax.xlane.f32.xlu1 %v3176_v58 }
 0x352   :  { %1344 = vmax.xlane.f32.xlu0 %v3180_v59 }
 0x354   :  { %1346 = vmax.xlane.f32.xlu1 %v3184_v60 }
 0x3a2   :  { %v1289_v61 = vpop.xlane.xlu1 %1288 }
 0x3a3   :  { %v1350_v62 = vsub.f32 %v3033_v33, %v1289_v61  ;;  %v1285_v63 = vpop.xlane.xlu0 %1284 }
 0x3a4   :  { %v1348_v6 = vsub.f32 %v3036_v57, %v1285_v63 }
 0x3a5   :  { %v1384_v21 = vmul.f32 1.442695, %v1350_v62 }
 0x3a6   :  { %v1380_v8 = vmul.f32 1.442695, %v1348_v6  ;;  %v1291_v38 = vpop.xlane.xlu1 %1290 }
 0x3a7   :  { %2249 = vpow2.f32 %v1384_v21  ;;  %v1351_v51 = vsub.f32 %v3041_v40, %v1291_v38  ;;  %v1287_v5 = vpop.xlane.xlu0 %1286 }
 0x3a8   :  { %v1349_v31 = vsub.f32 %v3044_v41, %v1287_v5  ;;  %2251 = vpow2.f32 %v1380_v8 }
 0x3a9   :  { %v1386_v22 = vmul.f32 1.442695, %v1351_v51 }
 0x3aa   :  { %v1382_v39 = vmul.f32 1.442695, %v1349_v31 }
 0x3ab   :  { %2253 = vpow2.f32 %v1386_v22  ;;  %v1297_v53 = vpop.xlane.xlu0 %1296 }
 0x3ac   :  { %v1354_v0 = vsub.f32 %v3049_v43, %v1297_v53  ;;  %v1299_v33 = vpop.xlane.xlu1 %1298  ;;  %2255 = vpow2.f32 %v1382_v39 }
 0x3ad   :  { %v1355_v2 = vsub.f32 %v3052_v45, %v1299_v33 }
 0x3ae   :  { %v1392_v57 = vmul.f32 1.442695, %v1354_v0 }
 0x3af   :  { %v1394_v3 = vmul.f32 1.442695, %v1355_v2  ;;  %v1293_v9 = vpop.xlane.xlu0 %1292 }
 0x3b0   :  { %2257 = vpow2.f32 %v1392_v57  ;;  %v1352_v40 = vsub.f32 %v3057_v47, %v1293_v9  ;;  %v1295_v11 = vpop.xlane.xlu1 %1294 }
 0x3b1   :  { %v3195_v12 = vpop.eup %2249  ;;  %v1353_v41 = vsub.f32 %v3060_v48, %v1295_v11  ;;  %2259 = vpow2.f32 %v1394_v3 }
 0x3b2   :  { %v1388_v14 = vmul.f32 1.442695, %v1352_v40  ;;  %1448 = vadd.xlane.f32.xlu0 %v3195_v12  ;;  %v3199_v19 = vpop.eup %2251 }
 0x3b3   :  { %v1390_v43 = vmul.f32 1.442695, %v1353_v41  ;;  %v1305_v17 = vpop.xlane.xlu0 %1304 }
 0x3b4   :  { %2261 = vpow2.f32 %v1388_v14  ;;  %v1358_v45 = vsub.f32 %v3064_v50, %v1305_v17  ;;  %v1307_v20 = vpop.xlane.xlu1 %1306  ;;  %v2194_v17 = vpop.f32.mrb[64].mxu1 }
 0x3b5   :  { %v3202_v25 = vpop.eup %2253  ;;  %v1359_v47 = vsub.f32 %v3080_v56, %v1307_v20  ;;  %2263 = vpow2.f32 %v1390_v43  ;;  %v1701_v20 = vpop.f32.mrb[65].mxu1 }
 0x3b6   :  { %v1400_v28 = vmul.f32 1.442695, %v1358_v45  ;;  %1450 = vadd.xlane.f32.xlu1 %v3202_v25  ;;  %1444 = vadd.xlane.f32.xlu0 %v3199_v19  ;;  %v3208_v44 = vpop.eup %2255 }
 0x3b7   :  { %v1402_v48 = vmul.f32 1.442695, %v1359_v47  ;;  %v1301_v30 = vpop.xlane.xlu0 %1300 }
 0x3b8   :  { %2265 = vpow2.f32 %v1400_v28  ;;  %v1356_v32 = vsub.f32 %v3087_v37, %v1301_v30  ;;  %v1303_v35 = vpop.xlane.xlu1 %1302  ;;  %v2195_v28 = vpop.f32.mrb[66].mxu1 }
 0x3b9   :  { %v1357_v50 = vsub.f32 %v3090_v52, %v1303_v35  ;;  %2267 = vpow2.f32 %v1402_v48  ;;  %v1704_v35 = vpop.f32.mrb[67].mxu1 }
 0x3ba   :  { %v3211_v54 = vpop.eup %2257  ;;  %v1396_v49 = vmul.f32 1.442695, %v1356_v32  ;;  %1446 = vadd.xlane.f32.xlu1 %v3208_v44  ;;  %v3257_v32 = vld [vmem:[%s3589_s11] ss:$0 sm:$0xff] }
 0x3bb   :  { %v1398_v56 = vmul.f32 1.442695, %v1357_v50  ;;  %1456 = vadd.xlane.f32.xlu0 %v3211_v54  ;;  %v1313_v55 = vpop.xlane.xlu0 %1312  ;;  %v3216_v37 = vpop.eup %2259 }
 0x3bc   :  { %2269 = vpow2.f32 %v1396_v49  ;;  %v1362_v61 = vsub.f32 %v3094_v23, %v1313_v55  ;;  %v1315_v62 = vpop.xlane.xlu1 %1314  ;;  %v1710_v49 = vadd.f32 %v2194_v17, %v3257_v32 }
 0x3bd   :  { %v1363_v63 = vsub.f32 %v3110_v1, %v1315_v62  ;;  %2271 = vpow2.f32 %v1398_v56  ;;  %v1713_v56 = vadd.f32 %v2195_v28, %v3257_v32  ;;  %v1705_v62 = vadd.f32 %v3257_v32, %v1704_v35 }
 0x3be   :  { %v3219_v6 = vpop.eup %2261  ;;  %v1408_v52 = vmul.f32 1.442695, %v1362_v61  ;;  %1458 = vadd.xlane.f32.xlu1 %v3216_v37 }
 0x3bf   :  { %v1410_v21 = vmul.f32 1.442695, %v1363_v63  ;;  %1452 = vadd.xlane.f32.xlu0 %v3219_v6  ;;  %v1309_v8 = vpop.xlane.xlu0 %1308  ;;  %v3224_v23 = vpop.eup %2263 }
 0x3c0   :  { %2273 = vpow2.f32 %v1408_v52  ;;  %v1360_v38 = vsub.f32 %v3117_v4, %v1309_v8  ;;  %v1311_v51 = vpop.xlane.xlu1 %1310 }
 0x3c1   :  { %v1361_v5 = vsub.f32 %v3120_v7, %v1311_v51  ;;  %2275 = vpow2.f32 %v1410_v21  ;;  %v1830_v21 = vmax.f32 %v1710_v49, 0.0 }
 0x3c2   :  { %v3227_v31 = vpop.eup %2265  ;;  %v1404_v1 = vmul.f32 1.442695, %v1360_v38  ;;  %1454 = vadd.xlane.f32.xlu1 %v3224_v23 }
 0x3c3   :  { %v1406_v22 = vmul.f32 1.442695, %v1361_v5  ;;  %1464 = vadd.xlane.f32.xlu0 %v3227_v31  ;;  %v1321_v39 = vpop.xlane.xlu0 %1320  ;;  %v3232_v4 = vpop.eup %2267  ;;  %v1831_v5 = vmax.f32 %v1713_v56, 0.0  ;;  %1862 = vst [vmem:[%s3590_s13 + $0x10] sm:$0xff] %v1830_v21 }
 0x3c4   :  { %2277 = vpow2.f32 %v1404_v1  ;;  %v1366_v53 = vsub.f32 %v3124_v10, %v1321_v39  ;;  %v1323_v0 = vpop.xlane.xlu1 %1322  ;;  %v1829_v1 = vmax.f32 %v1705_v62, 0.0 }
 0x3c5   :  { %v1367_v33 = vsub.f32 %v3128_v13, %v1323_v0  ;;  %2279 = vpow2.f32 %v1406_v22  ;;  %1863 = vst [vmem:[%s3590_s13 + $0x18] sm:$0xff] %v1831_v5 }
 0x3c6   :  { %v3235_v2 = vpop.eup %2269  ;;  %v1416_v7 = vmul.f32 1.442695, %v1366_v53  ;;  %1466 = vadd.xlane.f32.xlu1 %v3232_v4  ;;  %1861 = vst [vmem:[%s3590_s13 + $0x8] sm:$0xff] %v1829_v1 }
 0x3c7   :  { %v1418_v57 = vmul.f32 1.442695, %v1367_v33  ;;  %1460 = vadd.xlane.f32.xlu0 %v3235_v2  ;;  %v1317_v3 = vpop.xlane.xlu0 %1316  ;;  %v3240_v10 = vpop.eup %2271 }
 0x3c8   :  { %2281 = vpow2.f32 %v1416_v7  ;;  %v1364_v9 = vsub.f32 %v3133_v15, %v1317_v3  ;;  %v1319_v40 = vpop.xlane.xlu1 %1318 }
 0x3c9   :  { %v1365_v11 = vsub.f32 %v3136_v16, %v1319_v40  ;;  %2283 = vpow2.f32 %v1418_v57 }
 0x3ca   :  { %v3243_v41 = vpop.eup %2273  ;;  %v1412_v13 = vmul.f32 1.442695, %v1364_v9  ;;  %1462 = vadd.xlane.f32.xlu1 %v3240_v10 }
 0x3cb   :  { %v1414_v14 = vmul.f32 1.442695, %v1365_v11  ;;  %1472 = vadd.xlane.f32.xlu0 %v3243_v41  ;;  %v1329_v43 = vpop.xlane.xlu0 %1328  ;;  %v3248_v47 = vpop.eup %2275 }
 0x3cc   :  { %2285 = vpow2.f32 %v1412_v13  ;;  %v1370_v45 = vsub.f32 %v3140_v18, %v1329_v43  ;;  %v1331_v15 = vpop.xlane.xlu1 %1330 }
 0x3cd   :  { %v1371_v16 = vsub.f32 %v3144_v24, %v1331_v15  ;;  %2287 = vpow2.f32 %v1414_v14  ;;  %v1702_v24 = vadd.f32 %v3257_v32, %v1701_v20 }
 0x3ce   :  { %v3251_v48 = vpop.eup %2277  ;;  %v1424_v30 = vmul.f32 1.442695, %v1370_v45  ;;  %1474 = vadd.xlane.f32.xlu1 %v3248_v47 }
 0x3cf   :  { %v1426_v18 = vmul.f32 1.442695, %v1371_v16  ;;  %1468 = vadd.xlane.f32.xlu0 %v3251_v48  ;;  %v1325_v50 = vpop.xlane.xlu0 %1324  ;;  %v3265_v63 = vpop.eup %2279  ;;  %v1828_v8 = vmax.f32 %v1702_v24, 0.0 }
 0x3d0   :  { %2289 = vpow2.f32 %v1424_v30  ;;  %v1368_v55 = vsub.f32 %v3149_v26, %v1325_v50  ;;  %v1327_v61 = vpop.xlane.xlu1 %1326 }
 0x3d1   :  { %v1369_v52 = vsub.f32 %v3152_v27, %v1327_v61  ;;  %2291 = vpow2.f32 %v1426_v18  ;;  %1860 = vst [vmem:[%s3590_s13] sm:$0xff] %v1828_v8  ;;  %v2198_v27 = vpop.f32.mrb[68].mxu1 }
 0x3d2   :  { %v3268_v38 = vpop.eup %2281  ;;  %v1420_v51 = vmul.f32 1.442695, %v1368_v55  ;;  %1470 = vadd.xlane.f32.xlu1 %v3265_v63  ;;  %v1717_v0 = vpop.f32.mrb[69].mxu1  ;;  %v1726_v13 = vadd.f32 %v2198_v27, %v3257_v32 }
 0x3d3   :  { %v1422_v22 = vmul.f32 1.442695, %v1369_v52  ;;  %1480 = vadd.xlane.f32.xlu0 %v3268_v38  ;;  %v1337_v26 = vpop.xlane.xlu0 %1336  ;;  %v3285_v33 = vpop.eup %2283  ;;  %v1718_v14 = vadd.f32 %v3257_v32, %v1717_v0 }
 0x3d4   :  { %2293 = vpow2.f32 %v1420_v51  ;;  %v1374_v39 = vsub.f32 %v3156_v29, %v1337_v26  ;;  %v1339_v53 = vpop.xlane.xlu1 %1338  ;;  %v2199_v57 = vpop.f32.mrb[70].mxu1  ;;  %v1834_v16 = vmax.f32 %v1726_v13, 0.0 }
 0x3d5   :  { %v1375_v7 = vsub.f32 %v3160_v34, %v1339_v53  ;;  %2295 = vpow2.f32 %v1422_v22  ;;  %v1720_v29 = vpop.f32.mrb[71].mxu1  ;;  %v1729_v43 = vadd.f32 %v2199_v57, %v3257_v32  ;;  %v1832_v28 = vmax.f32 %v1718_v14, 0.0 }
 0x3d6   :  { %v3288_v3 = vpop.eup %2285  ;;  %v1432_v9 = vmul.f32 1.442695, %v1374_v39  ;;  %1482 = vadd.xlane.f32.xlu1 %v3285_v33  ;;  %v1721_v15 = vadd.f32 %v3257_v32, %v1720_v29  ;;  %1866 = vst [vmem:[%s3590_s13 + $0x30] sm:$0xff] %v1834_v16 }
 0x3d7   :  { %v1434_v40 = vmul.f32 1.442695, %v1375_v7  ;;  %1476 = vadd.xlane.f32.xlu0 %v3288_v3  ;;  %v1333_v11 = vpop.xlane.xlu0 %1332  ;;  %v3295_v17 = vpop.eup %2287  ;;  %v1835_v18 = vmax.f32 %v1729_v43, 0.0  ;;  %1864 = vst [vmem:[%s3590_s13 + $0x20] sm:$0xff] %v1832_v28 }
 0x3d8   :  { %2297 = vpow2.f32 %v1432_v9  ;;  %v1372_v34 = vsub.f32 %v3165_v36, %v1333_v11  ;;  %v1335_v45 = vpop.xlane.xlu1 %1334  ;;  %v1833_v50 = vmax.f32 %v1721_v15, 0.0  ;;  %v2202_v36 = vpop.f32.mrb[72].mxu1 }
 0x3d9   :  { %v1373_v20 = vsub.f32 %v3168_v42, %v1335_v45  ;;  %2299 = vpow2.f32 %v1434_v40  ;;  %1867 = vst [vmem:[%s3590_s13 + $0x38] sm:$0xff] %v1835_v18  ;;  %v1733_v56 = vpop.f32.mrb[73].mxu1  ;;  %v1742_v5 = vadd.f32 %v2202_v36, %v3257_v32 }
 0x3da   :  { %v3300_v30 = vpop.eup %2289  ;;  %v1428_v35 = vmul.f32 1.442695, %v1372_v34  ;;  %1478 = vadd.xlane.f32.xlu1 %v3295_v17  ;;  %1865 = vst [vmem:[%s3590_s13 + $0x28] sm:$0xff] %v1833_v50  ;;  %v2203_v62 = vpop.f32.mrb[74].mxu1  ;;  %v1734_v1 = vadd.f32 %v3257_v32, %v1733_v56 }
 0x3db   :  { %v1430_v49 = vmul.f32 1.442695, %v1373_v20  ;;  %1488 = vadd.xlane.f32.xlu0 %v3300_v30  ;;  %v1341_v24 = vpop.xlane.xlu0 %1340  ;;  %v3317_v55 = vpop.eup %2291  ;;  %v1745_v22 = vadd.f32 %v2203_v62, %v3257_v32  ;;  %v1838_v0 = vmax.f32 %v1742_v5, 0.0 }
 0x3dc   :  { %2301 = vpow2.f32 %v1428_v35  ;;  %v1376_v42 = vsub.f32 %v3173_v46, %v1341_v24  ;;  %v1736_v46 = vpop.f32.mrb[75].mxu1  ;;  %v1836_v7 = vmax.f32 %v1734_v1, 0.0 }
 0x3dd   :  { %v1343_v61 = vpop.xlane.xlu1 %1342  ;;  %2303 = vpow2.f32 %v1430_v49  ;;  %v1737_v26 = vadd.f32 %v3257_v32, %v1736_v46  ;;  %v1839_v57 = vmax.f32 %v1745_v22, 0.0  ;;  %1870 = vst [vmem:[%s3590_s13 + $0x50] sm:$0xff] %v1838_v0 }
 0x3de   :  { %v3319_v52 = vpop.eup %2293  ;;  %v1436_v21 = vmul.f32 1.442695, %v1376_v42  ;;  %v1377_v8 = vsub.f32 %v3176_v58, %v1343_v61  ;;  %1490 = vadd.xlane.f32.xlu1 %v3317_v55  ;;  %1868 = vst [vmem:[%s3590_s13 + $0x40] sm:$0xff] %v1836_v7 }
 0x3df   :  { %1484 = vadd.xlane.f32.xlu0 %v3319_v52  ;;  %v1345_v51 = vpop.xlane.xlu0 %1344  ;;  %v3328_v27 = vpop.eup %2295  ;;  %v1837_v9 = vmax.f32 %v1737_v26, 0.0  ;;  %1871 = vst [vmem:[%s3590_s13 + $0x58] sm:$0xff] %v1839_v57 }
 0x3e0   :  { %2305 = vpow2.f32 %v1436_v21  ;;  %v1438_v39 = vmul.f32 1.442695, %v1377_v8  ;;  %v1378_v58 = vsub.f32 %v3180_v59, %v1345_v51  ;;  %v2206_v59 = vpop.f32.mrb[76].mxu1 }
 0x3e1   :  { %v1347_v53 = vpop.xlane.xlu1 %1346  ;;  %1869 = vst [vmem:[%s3590_s13 + $0x48] sm:$0xff] %v1837_v9  ;;  %v1749_v13 = vpop.f32.mrb[77].mxu1  ;;  %v1758_v15 = vadd.f32 %v2206_v59, %v3257_v32 }
 0x3e2   :  { %v3331_v29 = vpop.eup %2297  ;;  %2307 = vpow2.f32 %v1438_v39  ;;  %v1440_v40 = vmul.f32 1.442695, %v1378_v58  ;;  %v1379_v11 = vsub.f32 %v3184_v60, %v1347_v53  ;;  %1486 = vadd.xlane.f32.xlu1 %v3328_v27  ;;  %v2207_v43 = vpop.f32.mrb[78].mxu1  ;;  %v1750_v20 = vadd.f32 %v3257_v32, %v1749_v13 }
 0x3e3   :  { %1496 = vadd.xlane.f32.xlu0 %v3331_v29  ;;  %v3348_v14 = vpop.eup %2299  ;;  %v1752_v45 = vpop.f32.mrb[79].mxu1  ;;  %v1761_v16 = vadd.f32 %v2207_v43, %v3257_v32  ;;  %v1842_v18 = vmax.f32 %v1758_v15, 0.0 }
 0x3e4   :  { %2309 = vpow2.f32 %v1440_v40  ;;  %v1442_v60 = vmul.f32 1.442695, %v1379_v11  ;;  %v1753_v28 = vadd.f32 %v3257_v32, %v1752_v45  ;;  %v1840_v50 = vmax.f32 %v1750_v20, 0.0  ;;  %v2210_v42 = vpop.f32.mrb[80].mxu1 }
 0x3e5   :  { %v1843_v49 = vmax.f32 %v1761_v16, 0.0  ;;  %1874 = vst [vmem:[%s3590_s13 + $0x70] sm:$0xff] %v1842_v18  ;;  %v1765_v61 = vpop.f32.mrb[81].mxu1  ;;  %v1774_v46 = vadd.f32 %v2210_v42, %v3257_v32 }
 0x3e6   :  { %v3350_v34 = vpop.eup %2301  ;;  %2311 = vpow2.f32 %v1442_v60  ;;  %1498 = vadd.xlane.f32.xlu1 %v3348_v14  ;;  %v1841_v24 = vmax.f32 %v1753_v28, 0.0  ;;  %1872 = vst [vmem:[%s3590_s13 + $0x60] sm:$0xff] %v1840_v50  ;;  %v2211_v62 = vpop.f32.mrb[82].mxu1  ;;  %v1766_v51 = vadd.f32 %v3257_v32, %v1765_v61 }
 0x3e7   :  { %1492 = vadd.xlane.f32.xlu0 %v3350_v34  ;;  %v3358_v35 = vpop.eup %2303  ;;  %1875 = vst [vmem:[%s3590_s13 + $0x78] sm:$0xff] %v1843_v49  ;;  %v1768_v8 = vpop.f32.mrb[83].mxu1  ;;  %v1777_v5 = vadd.f32 %v2211_v62, %v3257_v32  ;;  %v1846_v26 = vmax.f32 %v1774_v46, 0.0 }
 0x3e8   :  { %1873 = vst [vmem:[%s3590_s13 + $0x68] sm:$0xff] %v1841_v24  ;;  %v1769_v1 = vadd.f32 %v3257_v32, %v1768_v8  ;;  %v1844_v39 = vmax.f32 %v1766_v51, 0.0  ;;  %v2214_v0 = vpop.f32.mrb[84].mxu1 }
 0x3e9   :  { %v1847_v58 = vmax.f32 %v1777_v5, 0.0  ;;  %1878 = vst [vmem:[%s3590_s13 + $0x90] sm:$0xff] %v1846_v26  ;;  %v1781_v7 = vpop.f32.mrb[85].mxu1  ;;  %v1790_v40 = vadd.f32 %v2214_v0, %v3257_v32 }
 0x3ea   :  { %v3360_v36 = vpop.eup %2305  ;;  %1494 = vadd.xlane.f32.xlu1 %v3358_v35  ;;  %v1845_v53 = vmax.f32 %v1769_v1, 0.0  ;;  %1876 = vst [vmem:[%s3590_s13 + $0x80] sm:$0xff] %v1844_v39  ;;  %v2215_v57 = vpop.f32.mrb[86].mxu1  ;;  %v1782_v11 = vadd.f32 %v3257_v32, %v1781_v7 }
 0x3eb   :  { %1500 = vadd.xlane.f32.xlu0 %v3360_v36  ;;  %1879 = vst [vmem:[%s3590_s13 + $0x98] sm:$0xff] %v1847_v58  ;;  %v1784_v9 = vpop.f32.mrb[87].mxu1  ;;  %v1793_v59 = vadd.f32 %v2215_v57, %v3257_v32  ;;  %v1850_v13 = vmax.f32 %v1790_v40, 0.0 }
 0x3ec   :  { %v3376_v56 = vpop.eup %2307  ;;  %1877 = vst [vmem:[%s3590_s13 + $0x88] sm:$0xff] %v1845_v53  ;;  %v1785_v60 = vadd.f32 %v3257_v32, %v1784_v9  ;;  %v1848_v43 = vmax.f32 %v1782_v11, 0.0  ;;  %v2218_v20 = vpop.f32.mrb[88].mxu1 }
 0x3ed   :  { %v1851_v45 = vmax.f32 %v1793_v59, 0.0  ;;  %1882 = vst [vmem:[%s3590_s13 + $0xb0] sm:$0xff] %v1850_v13  ;;  %v1797_v16 = vpop.f32.mrb[89].mxu1  ;;  %v1806_v50 = vadd.f32 %v2218_v20, %v3257_v32 }
 0x3ee   :  { %v3378_v21 = vpop.eup %2309  ;;  %1502 = vadd.xlane.f32.xlu1 %v3376_v56  ;;  %v1849_v15 = vmax.f32 %v1785_v60, 0.0  ;;  %1880 = vst [vmem:[%s3590_s13 + $0xa0] sm:$0xff] %v1848_v43  ;;  %v2219_v28 = vpop.f32.mrb[90].mxu1  ;;  %v1798_v49 = vadd.f32 %v3257_v32, %v1797_v16 }
 0x3ef   :  { %1504 = vadd.xlane.f32.xlu0 %v3378_v21  ;;  %1883 = vst [vmem:[%s3590_s13 + $0xb8] sm:$0xff] %v1851_v45  ;;  %v1800_v18 = vpop.f32.mrb[91].mxu1  ;;  %v1809_v24 = vadd.f32 %v2219_v28, %v3257_v32  ;;  %v1854_v61 = vmax.f32 %v1806_v50, 0.0 }
 0x3f0   :  { %v3386_v22 = vpop.eup %2311  ;;  %1881 = vst [vmem:[%s3590_s13 + $0xa8] sm:$0xff] %v1849_v15  ;;  %v1801_v42 = vadd.f32 %v3257_v32, %v1800_v18  ;;  %v1852_v62 = vmax.f32 %v1798_v49, 0.0  ;;  %v2222_v51 = vpop.f32.mrb[92].mxu1 }
 0x3f1   :  { %v1855_v8 = vmax.f32 %v1809_v24, 0.0  ;;  %1886 = vst [vmem:[%s3590_s13 + $0xd0] sm:$0xff] %v1854_v61  ;;  %v1813_v5 = vpop.f32.mrb[93].mxu1  ;;  %v1822_v39 = vadd.f32 %v2222_v51, %v3257_v32 }
 0x3f2   :  { %1506 = vadd.xlane.f32.xlu1 %v3386_v22  ;;  %v1853_v46 = vmax.f32 %v1801_v42, 0.0  ;;  %1884 = vst [vmem:[%s3590_s13 + $0xc0] sm:$0xff] %v1852_v62  ;;  %v2223_v1 = vpop.f32.mrb[94].mxu1  ;;  %v1814_v58 = vadd.f32 %v3257_v32, %v1813_v5 }
 0x3f3   :  { %1887 = vst [vmem:[%s3590_s13 + $0xd8] sm:$0xff] %v1855_v8  ;;  %v1816_v26 = vpop.f32.mrb[95].mxu1  ;;  %v1825_v53 = vadd.f32 %v2223_v1, %v3257_v32  ;;  %v1858_v7 = vmax.f32 %v1822_v39, 0.0 }
 0x3f4   :  { %1885 = vst [vmem:[%s3590_s13 + $0xc8] sm:$0xff] %v1853_v46  ;;  %v1817_v0 = vadd.f32 %v3257_v32, %v1816_v26  ;;  %v1856_v57 = vmax.f32 %v1814_v58, 0.0 }
 0x3f5   :  { %v1859_v9 = vmax.f32 %v1825_v53, 0.0  ;;  %1890 = vst [vmem:[%s3590_s13 + $0xf0] sm:$0xff] %v1858_v7 }
 0x3f6   :  { %v1857_v40 = vmax.f32 %v1817_v0, 0.0  ;;  %1888 = vst [vmem:[%s3590_s13 + $0xe0] sm:$0xff] %v1856_v57 }
 0x3f7   :  { %1891 = vst [vmem:[%s3590_s13 + $0xf8] sm:$0xff] %v1859_v9 }
 0x3f8   :  { %1889 = vst [vmem:[%s3590_s13 + $0xe8] sm:$0xff] %v1857_v40 }
 0x43f   :  { %v1449_v32 = vpop.xlane.xlu0 %1448 }
 0x440   :  { %2313 = vrcp.f32 %v1449_v32 }
 0x443   :  { %v1451_v11 = vpop.xlane.xlu1 %1450  ;;  %v1445_v59 = vpop.xlane.xlu0 %1444 }
 0x444   :  { %2315 = vrcp.f32 %v1451_v11 }
 0x445   :  { %2317 = vrcp.f32 %v1445_v59 }
 0x447   :  { %v1447_v60 = vpop.xlane.xlu1 %1446 }
 0x448   :  { %2319 = vrcp.f32 %v1447_v60  ;;  %v1457_v13 = vpop.xlane.xlu0 %1456 }
 0x449   :  { %2321 = vrcp.f32 %v1457_v13 }
 0x44a   :  { %v2314_v43 = vpop.eup %2313 }
 0x44b   :  { %v1542_v45 = vmul.f32 %v2314_v43, %v3195_v12  ;;  %v1459_v15 = vpop.xlane.xlu1 %1458 }
 0x44c   :  { %2323 = vrcp.f32 %v1459_v15  ;;  %v1453_v20 = vpop.xlane.xlu0 %1452 }
 0x44d   :  { %1574 = vst [vmem:[%s3591_s14 + $0x10] sm:$0xff] %v1542_v45  ;;  %2325 = vrcp.f32 %v1453_v20 }
 0x44e   :  { %v2316_v16 = vpop.eup %2315 }
 0x44f   :  { %v2318_v28 = vpop.eup %2317  ;;  %v1543_v18 = vmul.f32 %v2316_v16, %v3202_v25  ;;  %v1455_v50 = vpop.xlane.xlu1 %1454 }
 0x450   :  { %v1540_v49 = vmul.f32 %v2318_v28, %v3199_v19  ;;  %2327 = vrcp.f32 %v1455_v50  ;;  %v1465_v24 = vpop.xlane.xlu0 %1464 }
 0x451   :  { %1575 = vst [vmem:[%s3591_s14 + $0x18] sm:$0xff] %v1543_v18  ;;  %2329 = vrcp.f32 %v1465_v24 }
 0x452   :  { %v2320_v12 = vpop.eup %2319  ;;  %1572 = vst [vmem:[%s3591_s14] sm:$0xff] %v1540_v49 }
 0x453   :  { %v2322_v42 = vpop.eup %2321  ;;  %v1541_v61 = vmul.f32 %v2320_v12, %v3208_v44  ;;  %v1467_v62 = vpop.xlane.xlu1 %1466 }
 0x454   :  { %v1546_v25 = vmul.f32 %v2322_v42, %v3211_v54  ;;  %2331 = vrcp.f32 %v1467_v62  ;;  %v1461_v19 = vpop.xlane.xlu0 %1460 }
 0x455   :  { %1573 = vst [vmem:[%s3591_s14 + $0x8] sm:$0xff] %v1541_v61  ;;  %2333 = vrcp.f32 %v1461_v19 }
 0x456   :  { %v2324_v8 = vpop.eup %2323  ;;  %1578 = vst [vmem:[%s3591_s14 + $0x30] sm:$0xff] %v1546_v25 }
 0x457   :  { %v2326_v46 = vpop.eup %2325  ;;  %v1547_v51 = vmul.f32 %v2324_v8, %v3216_v37  ;;  %v1463_v5 = vpop.xlane.xlu1 %1462 }
 0x458   :  { %v1544_v44 = vmul.f32 %v2326_v46, %v3219_v6  ;;  %2335 = vrcp.f32 %v1463_v5  ;;  %v1473_v54 = vpop.xlane.xlu0 %1472 }
 0x459   :  { %1579 = vst [vmem:[%s3591_s14 + $0x38] sm:$0xff] %v1547_v51  ;;  %2337 = vrcp.f32 %v1473_v54 }
 0x45a   :  { %v2328_v1 = vpop.eup %2327  ;;  %1576 = vst [vmem:[%s3591_s14 + $0x20] sm:$0xff] %v1544_v44 }
 0x45b   :  { %v2330_v26 = vpop.eup %2329  ;;  %v1545_v39 = vmul.f32 %v2328_v1, %v3224_v23  ;;  %v1475_v58 = vpop.xlane.xlu1 %1474 }
 0x45c   :  { %v1550_v37 = vmul.f32 %v2330_v26, %v3227_v31  ;;  %2339 = vrcp.f32 %v1475_v58  ;;  %v1469_v6 = vpop.xlane.xlu0 %1468 }
 0x45d   :  { %1577 = vst [vmem:[%s3591_s14 + $0x28] sm:$0xff] %v1545_v39  ;;  %2341 = vrcp.f32 %v1469_v6 }
 0x45e   :  { %v2332_v53 = vpop.eup %2331  ;;  %1582 = vst [vmem:[%s3591_s14 + $0x50] sm:$0xff] %v1550_v37 }
 0x45f   :  { %v2334_v0 = vpop.eup %2333  ;;  %v1551_v7 = vmul.f32 %v2332_v53, %v3232_v4  ;;  %v1471_v57 = vpop.xlane.xlu1 %1470 }
 0x460   :  { %v1548_v23 = vmul.f32 %v2334_v0, %v3235_v2  ;;  %2343 = vrcp.f32 %v1471_v57  ;;  %v1481_v31 = vpop.xlane.xlu0 %1480 }
 0x461   :  { %1583 = vst [vmem:[%s3591_s14 + $0x58] sm:$0xff] %v1551_v7  ;;  %2345 = vrcp.f32 %v1481_v31 }
 0x462   :  { %v2336_v9 = vpop.eup %2335  ;;  %1580 = vst [vmem:[%s3591_s14 + $0x40] sm:$0xff] %v1548_v23 }
 0x463   :  { %v2338_v40 = vpop.eup %2337  ;;  %v1549_v32 = vmul.f32 %v2336_v9, %v3240_v10  ;;  %v1483_v11 = vpop.xlane.xlu1 %1482 }
 0x464   :  { %v1554_v4 = vmul.f32 %v2338_v40, %v3243_v41  ;;  %2347 = vrcp.f32 %v1483_v11  ;;  %v1477_v2 = vpop.xlane.xlu0 %1476 }
 0x465   :  { %1581 = vst [vmem:[%s3591_s14 + $0x48] sm:$0xff] %v1549_v32  ;;  %2349 = vrcp.f32 %v1477_v2 }
 0x466   :  { %v2340_v59 = vpop.eup %2339  ;;  %1586 = vst [vmem:[%s3591_s14 + $0x70] sm:$0xff] %v1554_v4 }
 0x467   :  { %v2342_v60 = vpop.eup %2341  ;;  %v1555_v13 = vmul.f32 %v2340_v59, %v3248_v47  ;;  %v1479_v43 = vpop.xlane.xlu1 %1478 }
 0x468   :  { %v1552_v10 = vmul.f32 %v2342_v60, %v3251_v48  ;;  %2351 = vrcp.f32 %v1479_v43  ;;  %v1489_v41 = vpop.xlane.xlu0 %1488 }
 0x469   :  { %1587 = vst [vmem:[%s3591_s14 + $0x78] sm:$0xff] %v1555_v13  ;;  %2353 = vrcp.f32 %v1489_v41 }
 0x46a   :  { %v2344_v45 = vpop.eup %2343  ;;  %1584 = vst [vmem:[%s3591_s14 + $0x60] sm:$0xff] %v1552_v10 }
 0x46b   :  { %v2346_v15 = vpop.eup %2345  ;;  %v1553_v20 = vmul.f32 %v2344_v45, %v3265_v63  ;;  %v1491_v16 = vpop.xlane.xlu1 %1490 }
 0x46c   :  { %v1558_v47 = vmul.f32 %v2346_v15, %v3268_v38  ;;  %2355 = vrcp.f32 %v1491_v16  ;;  %v1485_v48 = vpop.xlane.xlu0 %1484 }
 0x46d   :  { %1585 = vst [vmem:[%s3591_s14 + $0x68] sm:$0xff] %v1553_v20  ;;  %2357 = vrcp.f32 %v1485_v48 }
 0x46e   :  { %v2348_v28 = vpop.eup %2347  ;;  %1590 = vst [vmem:[%s3591_s14 + $0x90] sm:$0xff] %v1558_v47 }
 0x46f   :  { %v2350_v18 = vpop.eup %2349  ;;  %v1559_v50 = vmul.f32 %v2348_v28, %v3285_v33  ;;  %v1487_v49 = vpop.xlane.xlu1 %1486 }
 0x470   :  { %v1556_v63 = vmul.f32 %v2350_v18, %v3288_v3  ;;  %2359 = vrcp.f32 %v1487_v49  ;;  %v1497_v38 = vpop.xlane.xlu0 %1496 }
 0x471   :  { %1591 = vst [vmem:[%s3591_s14 + $0x98] sm:$0xff] %v1559_v50  ;;  %2361 = vrcp.f32 %v1497_v38 }
 0x472   :  { %v2352_v24 = vpop.eup %2351  ;;  %1588 = vst [vmem:[%s3591_s14 + $0x80] sm:$0xff] %v1556_v63 }
 0x473   :  { %v2354_v12 = vpop.eup %2353  ;;  %v1557_v42 = vmul.f32 %v2352_v24, %v3295_v17  ;;  %v1499_v61 = vpop.xlane.xlu1 %1498 }
 0x474   :  { %v1562_v33 = vmul.f32 %v2354_v12, %v3300_v30  ;;  %2363 = vrcp.f32 %v1499_v61  ;;  %v1493_v3 = vpop.xlane.xlu0 %1492 }
 0x475   :  { %1589 = vst [vmem:[%s3591_s14 + $0x88] sm:$0xff] %v1557_v42  ;;  %2365 = vrcp.f32 %v1493_v3 }
 0x476   :  { %v2356_v62 = vpop.eup %2355  ;;  %1594 = vst [vmem:[%s3591_s14 + $0xb0] sm:$0xff] %v1562_v33 }
 0x477   :  { %v2358_v25 = vpop.eup %2357  ;;  %v1563_v19 = vmul.f32 %v2356_v62, %v3317_v55  ;;  %v1495_v8 = vpop.xlane.xlu1 %1494 }
 0x478   :  { %v1560_v17 = vmul.f32 %v2358_v25, %v3319_v52  ;;  %2367 = vrcp.f32 %v1495_v8  ;;  %v1501_v30 = vpop.xlane.xlu0 %1500 }
 0x479   :  { %1595 = vst [vmem:[%s3591_s14 + $0xb8] sm:$0xff] %v1563_v19  ;;  %2369 = vrcp.f32 %v1501_v30 }
 0x47a   :  { %v2360_v46 = vpop.eup %2359  ;;  %1592 = vst [vmem:[%s3591_s14 + $0xa0] sm:$0xff] %v1560_v17 }
 0x47b   :  { %v2362_v51 = vpop.eup %2361  ;;  %v1561_v5 = vmul.f32 %v2360_v46, %v3328_v27  ;;  %v1503_v44 = vpop.xlane.xlu1 %1502 }
 0x47c   :  { %v1566_v55 = vmul.f32 %v2362_v51, %v3331_v29  ;;  %2371 = vrcp.f32 %v1503_v44  ;;  %v1505_v52 = vpop.xlane.xlu0 %1504 }
 0x47d   :  { %1593 = vst [vmem:[%s3591_s14 + $0xa8] sm:$0xff] %v1561_v5  ;;  %2373 = vrcp.f32 %v1505_v52 }
 0x47e   :  { %v2364_v54 = vpop.eup %2363  ;;  %1598 = vst [vmem:[%s3591_s14 + $0xd0] sm:$0xff] %v1566_v55 }
 0x47f   :  { %v2366_v1 = vpop.eup %2365  ;;  %v1567_v26 = vmul.f32 %v2364_v54, %v3348_v14  ;;  %v1507_v39 = vpop.xlane.xlu1 %1506 }
 0x480   :  { %v1564_v27 = vmul.f32 %v2366_v1, %v3350_v34  ;;  %2375 = vrcp.f32 %v1507_v39 }
 0x481   :  { %1599 = vst [vmem:[%s3591_s14 + $0xd8] sm:$0xff] %v1567_v26 }
 0x482   :  { %v2368_v29 = vpop.eup %2367  ;;  %1596 = vst [vmem:[%s3591_s14 + $0xc0] sm:$0xff] %v1564_v27 }
 0x483   :  { %v2370_v58 = vpop.eup %2369  ;;  %v1565_v37 = vmul.f32 %v2368_v29, %v3358_v35 }
 0x484   :  { %v1568_v6 = vmul.f32 %v2370_v58, %v3360_v36 }
 0x485   :  { %1597 = vst [vmem:[%s3591_s14 + $0xc8] sm:$0xff] %v1565_v37 }
 0x486   :  { %v2372_v14 = vpop.eup %2371  ;;  %1600 = vst [vmem:[%s3591_s14 + $0xe0] sm:$0xff] %v1568_v6 }
 0x487   :  { %v2374_v34 = vpop.eup %2373  ;;  %v1569_v53 = vmul.f32 %v2372_v14, %v3376_v56 }
 0x488   :  { %v1570_v0 = vmul.f32 %v2374_v34, %v3378_v21 }
 0x489   :  { %1601 = vst [vmem:[%s3591_s14 + $0xe8] sm:$0xff] %v1569_v53 }
 0x48a   :  { %v2376_v35 = vpop.eup %2375  ;;  %1602 = vst [vmem:[%s3591_s14 + $0xf0] sm:$0xff] %v1570_v0 }
 0x48b   :  { %v1571_v36 = vmul.f32 %v2376_v35, %v3386_v22 }
 0x48d   :  { %1603 = vst [vmem:[%s3591_s14 + $0xf8] sm:$0xff] %v1571_v36 }

</bundles_post_ra>
